<compile_context>
chip_gen: v5e
topology: v5e:2x2
jax: 0.10.0
libtpu: 0.0.40
codegen_flags: <defaults>
</compile_context>

<pallas_src>
import functools

import jax
import jax.numpy as jnp
from jax import lax
from jax.experimental import pallas as pl
from jax.experimental.pallas import tpu as pltpu


# ------------------------------- helpers ------------------------------------


def _layer_norm(x, g, b, eps=1e-5):
    mu = jnp.mean(x, axis=-1, keepdims=True)
    var = jnp.mean((x - mu) ** 2, axis=-1, keepdims=True)
    return (x - mu) * lax.rsqrt(var + eps) * g + b


def _pick_tile(n, pref):
    if n <= pref:
        return n
    assert n % pref == 0, f"token count {n} must be a multiple of tile {pref}"
    return pref


# ----------------------------- Pallas kernels -------------------------------


def _source_kv_kernel(x_ref, w_in_ref, b_in_ref, ln1g_ref, ln1b_ref,
                      w_kv_ref, b_kv_ref, kv_ref):
    """Source tokens: Linear_in -> LN1 -> fused [K|V] projection (one matmul)."""
    x = x_ref[...].astype(jnp.bfloat16)
    h = jnp.dot(x, w_in_ref[...], preferred_element_type=jnp.float32) + b_in_ref[...]
    hn = _layer_norm(h, ln1g_ref[...], ln1b_ref[...])
    kv = jnp.dot(hn.astype(jnp.bfloat16), w_kv_ref[...],
                 preferred_element_type=jnp.float32) + b_kv_ref[...]
    kv_ref[...] = kv.astype(kv_ref.dtype)


def _target_attn_kernel(xt_ref, tb_ref, sb_ref, kv_ref,
                        w_in_ref, b_in_ref, ln1g_ref, ln1b_ref,
                        wq_ref, bq_ref, wo_ref, bo_ref,
                        ln2g_ref, ln2b_ref, w1_ref, b1_ref, w2_ref, b2_ref,
                        wout_ref, bout_ref, o_ref, *, num_heads, c_lat):
    """Target tokens: Linear_in -> LN1 -> Q -> masked MHA over all sources
    -> out-proj + residual -> LN2 -> GELU MLP + residual -> output layer."""
    d_head = c_lat // num_heads
    scale = 1.0 / (d_head ** 0.5)

    # Input layer (weight-tied with source) + pre-norm + Q projection.
    xt = xt_ref[...].astype(jnp.bfloat16)
    x_t = jnp.dot(xt, w_in_ref[...], preferred_element_type=jnp.float32) + b_in_ref[...]
    h_t = _layer_norm(x_t, ln1g_ref[...], ln1b_ref[...])
    q = jnp.dot(h_t.astype(jnp.bfloat16), wq_ref[...],
                preferred_element_type=jnp.float32) + bq_ref[...]

    # Attention mask from batch ids (computed on-the-fly; never materialised in HBM).
    mask = tb_ref[...] == sb_ref[...]                     # (tile_m, N) bool

    kv = kv_ref[...]                                      # (N, 2*C) bf16

    # Multi-head attention: static unrolled loop over heads (no per-head grid).
    heads = []
    for h in range(num_heads):
        qh = q[:, h * d_head:(h + 1) * d_head].astype(jnp.bfloat16)      # (m, dh)
        kh = kv[:, h * d_head:(h + 1) * d_head]                          # (n, dh)
        vh = kv[:, c_lat + h * d_head:c_lat + (h + 1) * d_head]          # (n, dh)
        # q @ k^T without explicit transpose: contract last dims of both.
        s = lax.dot_general(qh, kh, (((1,), (1,)), ((), ())),
                            preferred_element_type=jnp.float32) * scale  # (m, n)
        s = jnp.where(mask, s, -1e30)                     # finite sentinel (no NaN rows)
        s = s - jnp.max(s, axis=-1, keepdims=True)
        p = jnp.exp(s)
        p = p * pl.reciprocal(jnp.sum(p, axis=-1, keepdims=True), approx=True)
        heads.append(jnp.dot(p.astype(jnp.bfloat16), vh,
                             preferred_element_type=jnp.float32))        # (m, dh)
    a = jnp.concatenate(heads, axis=-1)                   # (m, C) f32

    # Output projection + residual, LN2, GELU MLP + residual, final output layer.
    x_attn = x_t + jnp.dot(a.astype(jnp.bfloat16), wo_ref[...],
                           preferred_element_type=jnp.float32) + bo_ref[...]
    h2 = _layer_norm(x_attn, ln2g_ref[...], ln2b_ref[...])
    hid = jax.nn.gelu(jnp.dot(h2.astype(jnp.bfloat16), w1_ref[...],
                              preferred_element_type=jnp.float32) + b1_ref[...])
    x_blk = x_attn + jnp.dot(hid.astype(jnp.bfloat16), w2_ref[...],
                             preferred_element_type=jnp.float32) + b2_ref[...]
    o_ref[...] = (jnp.dot(x_blk.astype(jnp.bfloat16), wout_ref[...],
                          preferred_element_type=jnp.float32) + bout_ref[...]
                  ).astype(o_ref.dtype)


# --------------------------- module forward (glue) ---------------------------


def cross_attention_tokeniser_forward(params, x, batch, sampling_index):
    num_heads = params["num_heads"]
    c_lat = params["w_in"].shape[1]
    d_model = params["w_out"].shape[1]

    n_tok, c_in = x.shape

    # data.x[data.scale0_sampling_index] and batch[sampling_index] (tiny gathers).
    x_target = x[sampling_index]
    target_batch = batch[sampling_index]
    m_tok = x_target.shape[0]

    bf = lambda w: w.astype(jnp.bfloat16)
    row = lambda b: b.reshape(1, -1).astype(jnp.float32)

    # Fused [K|V] projection weights.
    w_kv = bf(jnp.concatenate([params["wk"], params["wv"]], axis=1))
    b_kv = row(jnp.concatenate([params["bk"], params["bv"]]))

    # ---- Kernel A: source path (tiled over source tokens) ----
    tile_n = _pick_tile(n_tok, 512)
    kv = pl.pallas_call(
        _source_kv_kernel,
        grid=(n_tok // tile_n,),
        in_specs=[
            pl.BlockSpec((tile_n, c_in), lambda i: (i, 0)),
            pl.BlockSpec((c_in, c_lat), lambda i: (0, 0)),
            pl.BlockSpec((1, c_lat), lambda i: (0, 0)),
            pl.BlockSpec((1, c_lat), lambda i: (0, 0)),
            pl.BlockSpec((1, c_lat), lambda i: (0, 0)),
            pl.BlockSpec((c_lat, 2 * c_lat), lambda i: (0, 0)),
            pl.BlockSpec((1, 2 * c_lat), lambda i: (0, 0)),
        ],
        out_specs=pl.BlockSpec((tile_n, 2 * c_lat), lambda i: (i, 0)),
        out_shape=jax.ShapeDtypeStruct((n_tok, 2 * c_lat), jnp.bfloat16),
        compiler_params=pltpu.CompilerParams(dimension_semantics=("parallel",)),
    )(
        x, bf(params["w_in"]), row(params["b_in"]),
        row(params["ln1_g"]), row(params["ln1_b"]),
        w_kv, b_kv,
    )

    # ---- Kernel B: target path + attention + MLP + output (tiled over targets) ----
    tile_m = _pick_tile(m_tok, 256)
    hidden = params["w1"].shape[1]

    kernel = functools.partial(_target_attn_kernel, num_heads=num_heads, c_lat=c_lat)
    out = pl.pallas_call(
        kernel,
        grid=(m_tok // tile_m,),
        in_specs=[
            pl.BlockSpec((tile_m, c_in), lambda i: (i, 0)),          # x_target
            pl.BlockSpec((tile_m, 1), lambda i: (i, 0)),             # target batch ids
            pl.BlockSpec((1, n_tok), lambda i: (0, 0)),              # source batch ids
            pl.BlockSpec((n_tok, 2 * c_lat), lambda i: (0, 0)),      # fused K|V
            pl.BlockSpec((c_in, c_lat), lambda i: (0, 0)),           # w_in
            pl.BlockSpec((1, c_lat), lambda i: (0, 0)),              # b_in
            pl.BlockSpec((1, c_lat), lambda i: (0, 0)),              # ln1_g
            pl.BlockSpec((1, c_lat), lambda i: (0, 0)),              # ln1_b
            pl.BlockSpec((c_lat, c_lat), lambda i: (0, 0)),          # wq
            pl.BlockSpec((1, c_lat), lambda i: (0, 0)),              # bq
            pl.BlockSpec((c_lat, c_lat), lambda i: (0, 0)),          # wo
            pl.BlockSpec((1, c_lat), lambda i: (0, 0)),              # bo
            pl.BlockSpec((1, c_lat), lambda i: (0, 0)),              # ln2_g
            pl.BlockSpec((1, c_lat), lambda i: (0, 0)),              # ln2_b
            pl.BlockSpec((c_lat, hidden), lambda i: (0, 0)),         # w1
            pl.BlockSpec((1, hidden), lambda i: (0, 0)),             # b1
            pl.BlockSpec((hidden, c_lat), lambda i: (0, 0)),         # w2
            pl.BlockSpec((1, c_lat), lambda i: (0, 0)),              # b2
            pl.BlockSpec((c_lat, d_model), lambda i: (0, 0)),        # w_out
            pl.BlockSpec((1, d_model), lambda i: (0, 0)),            # b_out
        ],
        out_specs=pl.BlockSpec((tile_m, d_model), lambda i: (i, 0)),
        out_shape=jax.ShapeDtypeStruct((m_tok, d_model), jnp.float32),
        compiler_params=pltpu.CompilerParams(dimension_semantics=("parallel",)),
    )(
        x_target,
        target_batch.reshape(-1, 1).astype(jnp.int32),
        batch.reshape(1, -1).astype(jnp.int32),
        kv,
        bf(params["w_in"]), row(params["b_in"]),
        row(params["ln1_g"]), row(params["ln1_b"]),
        bf(params["wq"]), row(params["bq"]),
        bf(params["wo"]), row(params["bo"]),
        row(params["ln2_g"]), row(params["ln2_b"]),
        bf(params["w1"]), row(params["b1"]),
        bf(params["w2"]), row(params["b2"]),
        bf(params["w_out"]), row(params["b_out"]),
    )
    return out


# ------------------------------ parameter init -------------------------------


def init_params(key, num_input_channels, d_model, num_attn_heads, num_latent_channels):
    c_in, c_lat = num_input_channels, num_latent_channels
    hidden = 4 * c_lat
    keys = jax.random.split(key, 16)

    def w(k, shape, fan_in):
        bound = 1.0 / (fan_in ** 0.5)
        return jax.random.uniform(k, shape, jnp.float32, -bound, bound)

    return {
        "num_heads": num_attn_heads,
        # input layer (tied source/target)
        "w_in": w(keys[0], (c_in, c_lat), c_in),
        "b_in": w(keys[1], (c_lat,), c_in),
        # attention block
        "ln1_g": jnp.ones((c_lat,), jnp.float32),
        "ln1_b": jnp.zeros((c_lat,), jnp.float32),
        "wq": w(keys[2], (c_lat, c_lat), c_lat),
        "bq": w(keys[3], (c_lat,), c_lat),
        "wk": w(keys[4], (c_lat, c_lat), c_lat),
        "bk": w(keys[5], (c_lat,), c_lat),
        "wv": w(keys[6], (c_lat, c_lat), c_lat),
        "bv": w(keys[7], (c_lat,), c_lat),
        "wo": w(keys[8], (c_lat, c_lat), c_lat),
        "bo": w(keys[9], (c_lat,), c_lat),
        "ln2_g": jnp.ones((c_lat,), jnp.float32),
        "ln2_b": jnp.zeros((c_lat,), jnp.float32),
        "w1": w(keys[10], (c_lat, hidden), c_lat),
        "b1": w(keys[11], (hidden,), c_lat),
        "w2": w(keys[12], (hidden, c_lat), hidden),
        "b2": w(keys[13], (c_lat,), hidden),
        # output layer
        "w_out": w(keys[14], (c_lat, d_model), c_lat),
        "b_out": w(keys[15], (d_model,), c_lat),
    }


# ----------------------------------- main ------------------------------------

if __name__ == "__main__":
    num_input_channels = 8
    d_model = 32
    num_attn_heads = 4
    num_latent_channels = 32  # default: num_latent_channels or d_model

    n_points = 16   # source point cloud size
    n_sampled = 8   # |scale0_sampling_index| (target tokens)

    key = jax.random.PRNGKey(0)
    k_x, k_pos, k_params = jax.random.split(key, 3)

    x = jax.random.normal(k_x, (n_points, num_input_channels), jnp.float32)
    pos = jax.random.normal(k_pos, (n_points, 3), jnp.float32)  # cached only, unused by forward
    batch = jnp.repeat(jnp.arange(2, dtype=jnp.int32), n_points // 2)
    sampling_index = jnp.array([0, 2, 4, 6, 8, 10, 12, 14], dtype=jnp.int32)

    params = init_params(k_params, num_input_channels, d_model, num_attn_heads,
                         num_latent_channels)

    fwd = jax.jit(functools.partial(cross_attention_tokeniser_forward, params))
    out = fwd(x, batch, sampling_index)
    jax.block_until_ready(out)

    assert out.shape == (n_sampled, d_model), out.shape
    assert bool(jnp.all(jnp.isfinite(out)))
    print("KERNEL_OK")
</pallas_src>

<mosaic_0001>
module attributes {stable_mosaic.version = 11 : i64} {
  func.func @_target_attn_kernel(%arg0: i32, %arg1: memref<8x8xf32, #tpu.memory_space<vmem>>, %arg2: memref<8x1xi32, #tpu.memory_space<vmem>>, %arg3: memref<1x16xi32, #tpu.memory_space<vmem>>, %arg4: memref<16x64xbf16, #tpu.memory_space<vmem>>, %arg5: memref<8x32xbf16, #tpu.memory_space<vmem>>, %arg6: memref<1x32xf32, #tpu.memory_space<vmem>>, %arg7: memref<1x32xf32, #tpu.memory_space<vmem>>, %arg8: memref<1x32xf32, #tpu.memory_space<vmem>>, %arg9: memref<32x32xbf16, #tpu.memory_space<vmem>>, %arg10: memref<1x32xf32, #tpu.memory_space<vmem>>, %arg11: memref<32x32xbf16, #tpu.memory_space<vmem>>, %arg12: memref<1x32xf32, #tpu.memory_space<vmem>>, %arg13: memref<1x32xf32, #tpu.memory_space<vmem>>, %arg14: memref<1x32xf32, #tpu.memory_space<vmem>>, %arg15: memref<32x128xbf16, #tpu.memory_space<vmem>>, %arg16: memref<1x128xf32, #tpu.memory_space<vmem>>, %arg17: memref<128x32xbf16, #tpu.memory_space<vmem>>, %arg18: memref<1x32xf32, #tpu.memory_space<vmem>>, %arg19: memref<32x32xbf16, #tpu.memory_space<vmem>>, %arg20: memref<1x32xf32, #tpu.memory_space<vmem>>, %arg21: memref<8x32xf32, #tpu.memory_space<vmem>>) attributes {dimension_semantics = [#tpu.dimension_semantics<parallel>], iteration_bounds = array<i64: 1>, scalar_prefetch = 0 : i64, scratch_operands = 0 : i64, tpu.core_type = #tpu.core_type<tc>, window_params = [{transform_indices = @transform_0, window_bounds = array<i64: 8, 8>}, {transform_indices = @transform_1, window_bounds = array<i64: 8, 1>}, {pipeline_mode = #tpu.pipeline_mode<synchronous>, transform_indices = @transform_2, window_bounds = array<i64: 1, 16>}, {pipeline_mode = #tpu.pipeline_mode<synchronous>, transform_indices = @transform_3, window_bounds = array<i64: 16, 64>}, {pipeline_mode = #tpu.pipeline_mode<synchronous>, transform_indices = @transform_4, window_bounds = array<i64: 8, 32>}, {pipeline_mode = #tpu.pipeline_mode<synchronous>, transform_indices = @transform_5, window_bounds = array<i64: 1, 32>}, {pipeline_mode = #tpu.pipeline_mode<synchronous>, transform_indices = @transform_6, window_bounds = array<i64: 1, 32>}, {pipeline_mode = #tpu.pipeline_mode<synchronous>, transform_indices = @transform_7, window_bounds = array<i64: 1, 32>}, {pipeline_mode = #tpu.pipeline_mode<synchronous>, transform_indices = @transform_8, window_bounds = array<i64: 32, 32>}, {pipeline_mode = #tpu.pipeline_mode<synchronous>, transform_indices = @transform_9, window_bounds = array<i64: 1, 32>}, {pipeline_mode = #tpu.pipeline_mode<synchronous>, transform_indices = @transform_10, window_bounds = array<i64: 32, 32>}, {pipeline_mode = #tpu.pipeline_mode<synchronous>, transform_indices = @transform_11, window_bounds = array<i64: 1, 32>}, {pipeline_mode = #tpu.pipeline_mode<synchronous>, transform_indices = @transform_12, window_bounds = array<i64: 1, 32>}, {pipeline_mode = #tpu.pipeline_mode<synchronous>, transform_indices = @transform_13, window_bounds = array<i64: 1, 32>}, {pipeline_mode = #tpu.pipeline_mode<synchronous>, transform_indices = @transform_14, window_bounds = array<i64: 32, 128>}, {pipeline_mode = #tpu.pipeline_mode<synchronous>, transform_indices = @transform_15, window_bounds = array<i64: 1, 128>}, {pipeline_mode = #tpu.pipeline_mode<synchronous>, transform_indices = @transform_16, window_bounds = array<i64: 128, 32>}, {pipeline_mode = #tpu.pipeline_mode<synchronous>, transform_indices = @transform_17, window_bounds = array<i64: 1, 32>}, {pipeline_mode = #tpu.pipeline_mode<synchronous>, transform_indices = @transform_18, window_bounds = array<i64: 32, 32>}, {pipeline_mode = #tpu.pipeline_mode<synchronous>, transform_indices = @transform_19, window_bounds = array<i64: 1, 32>}, {transform_indices = @transform_20, window_bounds = array<i64: 8, 32>}]} {
    %c0 = arith.constant 0 : index
    %c0_0 = arith.constant 0 : index
    %0 = vector.load %arg1[%c0, %c0_0] : memref<8x8xf32, #tpu.memory_space<vmem>>, vector<8x8xf32>
    %1 = arith.truncf %0 : vector<8x8xf32> to vector<8x8xbf16>
    %c0_1 = arith.constant 0 : index
    %c0_2 = arith.constant 0 : index
    %2 = vector.load %arg5[%c0_1, %c0_2] : memref<8x32xbf16, #tpu.memory_space<vmem>>, vector<8x32xbf16>
    %cst = arith.constant dense<0.000000e+00> : vector<8x32xf32>
    %3 = tpu.matmul %1, %2, %cst {dimension_numbers = #tpu.dot_dimension_numbers<[1], [0], [0], [1], [0, 0, 1, 1], [], []>} : vector<8x8xbf16>, vector<8x32xbf16>, vector<8x32xf32> -> vector<8x32xf32>
    %c0_3 = arith.constant 0 : index
    %c0_4 = arith.constant 0 : index
    %4 = vector.load %arg6[%c0_3, %c0_4] : memref<1x32xf32, #tpu.memory_space<vmem>>, vector<1x32xf32>
    %5 = vector.broadcast %4 : vector<1x32xf32> to vector<8x32xf32>
    %6 = arith.addf %3, %5 : vector<8x32xf32>
    %c0_5 = arith.constant 0 : index
    %c0_6 = arith.constant 0 : index
    %7 = vector.load %arg7[%c0_5, %c0_6] : memref<1x32xf32, #tpu.memory_space<vmem>>, vector<1x32xf32>
    %c0_7 = arith.constant 0 : index
    %c0_8 = arith.constant 0 : index
    %8 = vector.load %arg8[%c0_7, %c0_8] : memref<1x32xf32, #tpu.memory_space<vmem>>, vector<1x32xf32>
    %cst_9 = arith.constant dense<0.000000e+00> : vector<8xf32>
    %9 = vector.multi_reduction <add>, %6, %cst_9 [1] : vector<8x32xf32> to vector<8xf32>
    %10 = vector.shape_cast %9 : vector<8xf32> to vector<8x1xf32>
    %cst_10 = arith.constant 3.200000e+01 : f32
    %11 = vector.broadcast %cst_10 : f32 to vector<8x1xf32>
    %12 = arith.divf %10, %11 : vector<8x1xf32>
    %13 = vector.broadcast %12 : vector<8x1xf32> to vector<8x32xf32>
    %14 = arith.subf %6, %13 : vector<8x32xf32>
    %15 = arith.mulf %14, %14 : vector<8x32xf32>
    %cst_11 = arith.constant dense<0.000000e+00> : vector<8xf32>
    %16 = vector.multi_reduction <add>, %15, %cst_11 [1] : vector<8x32xf32> to vector<8xf32>
    %17 = vector.shape_cast %16 : vector<8xf32> to vector<8x1xf32>
    %cst_12 = arith.constant 3.200000e+01 : f32
    %18 = vector.broadcast %cst_12 : f32 to vector<8x1xf32>
    %19 = arith.divf %17, %18 : vector<8x1xf32>
    %20 = vector.broadcast %12 : vector<8x1xf32> to vector<8x32xf32>
    %21 = arith.subf %6, %20 : vector<8x32xf32>
    %cst_13 = arith.constant 9.99999974E-6 : f32
    %22 = vector.broadcast %cst_13 : f32 to vector<8x1xf32>
    %23 = arith.addf %19, %22 : vector<8x1xf32>
    %24 = math.rsqrt %23 : vector<8x1xf32>
    %25 = vector.broadcast %24 : vector<8x1xf32> to vector<8x32xf32>
    %26 = arith.mulf %21, %25 : vector<8x32xf32>
    %27 = vector.broadcast %7 : vector<1x32xf32> to vector<8x32xf32>
    %28 = arith.mulf %26, %27 : vector<8x32xf32>
    %29 = vector.broadcast %8 : vector<1x32xf32> to vector<8x32xf32>
    %30 = arith.addf %28, %29 : vector<8x32xf32>
    %31 = arith.truncf %30 : vector<8x32xf32> to vector<8x32xbf16>
    %c0_14 = arith.constant 0 : index
    %c0_15 = arith.constant 0 : index
    %32 = vector.load %arg9[%c0_14, %c0_15] : memref<32x32xbf16, #tpu.memory_space<vmem>>, vector<32x32xbf16>
    %cst_16 = arith.constant dense<0.000000e+00> : vector<8x32xf32>
    %33 = tpu.matmul %31, %32, %cst_16 {dimension_numbers = #tpu.dot_dimension_numbers<[1], [0], [0], [1], [0, 0, 1, 1], [], []>} : vector<8x32xbf16>, vector<32x32xbf16>, vector<8x32xf32> -> vector<8x32xf32>
    %c0_17 = arith.constant 0 : index
    %c0_18 = arith.constant 0 : index
    %34 = vector.load %arg10[%c0_17, %c0_18] : memref<1x32xf32, #tpu.memory_space<vmem>>, vector<1x32xf32>
    %35 = vector.broadcast %34 : vector<1x32xf32> to vector<8x32xf32>
    %36 = arith.addf %33, %35 : vector<8x32xf32>
    %c0_19 = arith.constant 0 : index
    %c0_20 = arith.constant 0 : index
    %37 = vector.load %arg2[%c0_19, %c0_20] : memref<8x1xi32, #tpu.memory_space<vmem>>, vector<8x1xi32>
    %c0_21 = arith.constant 0 : index
    %c0_22 = arith.constant 0 : index
    %38 = vector.load %arg3[%c0_21, %c0_22] : memref<1x16xi32, #tpu.memory_space<vmem>>, vector<1x16xi32>
    %39 = vector.broadcast %37 : vector<8x1xi32> to vector<8x16xi32>
    %40 = vector.broadcast %38 : vector<1x16xi32> to vector<8x16xi32>
    %41 = arith.cmpi eq, %39, %40 : vector<8x16xi32>
    %c0_23 = arith.constant 0 : index
    %c0_24 = arith.constant 0 : index
    %42 = vector.load %arg4[%c0_23, %c0_24] : memref<16x64xbf16, #tpu.memory_space<vmem>>, vector<16x64xbf16>
    %43 = vector.extract_strided_slice %36 {offsets = [0, 0], sizes = [8, 8], strides = [1, 1]} : vector<8x32xf32> to vector<8x8xf32>
    %44 = arith.truncf %43 : vector<8x8xf32> to vector<8x8xbf16>
    %45 = vector.extract_strided_slice %42 {offsets = [0, 0], sizes = [16, 8], strides = [1, 1]} : vector<16x64xbf16> to vector<16x8xbf16>
    %46 = vector.extract_strided_slice %42 {offsets = [0, 32], sizes = [16, 8], strides = [1, 1]} : vector<16x64xbf16> to vector<16x8xbf16>
    %cst_25 = arith.constant dense<0.000000e+00> : vector<8x16xf32>
    %47 = tpu.matmul %44, %45, %cst_25 {dimension_numbers = #tpu.dot_dimension_numbers<[1], [1], [0], [0], [0, 0, 1, 0], [], []>} : vector<8x8xbf16>, vector<16x8xbf16>, vector<8x16xf32> -> vector<8x16xf32>
    %cst_26 = arith.constant 0.353553385 : f32
    %48 = vector.broadcast %cst_26 : f32 to vector<8x16xf32>
    %49 = arith.mulf %47, %48 : vector<8x16xf32>
    %cst_27 = arith.constant -1.000000e+30 : f32
    %50 = vector.broadcast %cst_27 : f32 to vector<8x16xf32>
    %51 = arith.select %41, %49, %50 : vector<8x16xi1>, vector<8x16xf32>
    %cst_28 = arith.constant dense<0xFF800000> : vector<8xf32>
    %52 = vector.multi_reduction <maximumf>, %51, %cst_28 [1] : vector<8x16xf32> to vector<8xf32>
    %53 = vector.shape_cast %52 : vector<8xf32> to vector<8x1xf32>
    %54 = vector.broadcast %53 : vector<8x1xf32> to vector<8x16xf32>
    %55 = arith.subf %51, %54 : vector<8x16xf32>
    %56 = math.exp %55 : vector<8x16xf32>
    %cst_29 = arith.constant dense<0.000000e+00> : vector<8xf32>
    %57 = vector.multi_reduction <add>, %56, %cst_29 [1] : vector<8x16xf32> to vector<8xf32>
    %58 = vector.shape_cast %57 : vector<8xf32> to vector<8x1xf32>
    %59 = tpu.reciprocal %58 {approx = true} : vector<8x1xf32> -> vector<8x1xf32>
    %60 = vector.broadcast %59 : vector<8x1xf32> to vector<8x16xf32>
    %61 = arith.mulf %56, %60 : vector<8x16xf32>
    %62 = arith.truncf %61 : vector<8x16xf32> to vector<8x16xbf16>
    %cst_30 = arith.constant dense<0.000000e+00> : vector<8x8xf32>
    %63 = tpu.matmul %62, %46, %cst_30 {dimension_numbers = #tpu.dot_dimension_numbers<[1], [0], [0], [1], [0, 0, 1, 1], [], []>} : vector<8x16xbf16>, vector<16x8xbf16>, vector<8x8xf32> -> vector<8x8xf32>
    %64 = vector.extract_strided_slice %36 {offsets = [0, 8], sizes = [8, 8], strides = [1, 1]} : vector<8x32xf32> to vector<8x8xf32>
    %65 = arith.truncf %64 : vector<8x8xf32> to vector<8x8xbf16>
    %66 = vector.extract_strided_slice %42 {offsets = [0, 8], sizes = [16, 8], strides = [1, 1]} : vector<16x64xbf16> to vector<16x8xbf16>
    %67 = vector.extract_strided_slice %42 {offsets = [0, 40], sizes = [16, 8], strides = [1, 1]} : vector<16x64xbf16> to vector<16x8xbf16>
    %cst_31 = arith.constant dense<0.000000e+00> : vector<8x16xf32>
    %68 = tpu.matmul %65, %66, %cst_31 {dimension_numbers = #tpu.dot_dimension_numbers<[1], [1], [0], [0], [0, 0, 1, 0], [], []>} : vector<8x8xbf16>, vector<16x8xbf16>, vector<8x16xf32> -> vector<8x16xf32>
    %cst_32 = arith.constant 0.353553385 : f32
    %69 = vector.broadcast %cst_32 : f32 to vector<8x16xf32>
    %70 = arith.mulf %68, %69 : vector<8x16xf32>
    %cst_33 = arith.constant -1.000000e+30 : f32
    %71 = vector.broadcast %cst_33 : f32 to vector<8x16xf32>
    %72 = arith.select %41, %70, %71 : vector<8x16xi1>, vector<8x16xf32>
    %cst_34 = arith.constant dense<0xFF800000> : vector<8xf32>
    %73 = vector.multi_reduction <maximumf>, %72, %cst_34 [1] : vector<8x16xf32> to vector<8xf32>
    %74 = vector.shape_cast %73 : vector<8xf32> to vector<8x1xf32>
    %75 = vector.broadcast %74 : vector<8x1xf32> to vector<8x16xf32>
    %76 = arith.subf %72, %75 : vector<8x16xf32>
    %77 = math.exp %76 : vector<8x16xf32>
    %cst_35 = arith.constant dense<0.000000e+00> : vector<8xf32>
    %78 = vector.multi_reduction <add>, %77, %cst_35 [1] : vector<8x16xf32> to vector<8xf32>
    %79 = vector.shape_cast %78 : vector<8xf32> to vector<8x1xf32>
    %80 = tpu.reciprocal %79 {approx = true} : vector<8x1xf32> -> vector<8x1xf32>
    %81 = vector.broadcast %80 : vector<8x1xf32> to vector<8x16xf32>
    %82 = arith.mulf %77, %81 : vector<8x16xf32>
    %83 = arith.truncf %82 : vector<8x16xf32> to vector<8x16xbf16>
    %cst_36 = arith.constant dense<0.000000e+00> : vector<8x8xf32>
    %84 = tpu.matmul %83, %67, %cst_36 {dimension_numbers = #tpu.dot_dimension_numbers<[1], [0], [0], [1], [0, 0, 1, 1], [], []>} : vector<8x16xbf16>, vector<16x8xbf16>, vector<8x8xf32> -> vector<8x8xf32>
    %85 = vector.extract_strided_slice %36 {offsets = [0, 16], sizes = [8, 8], strides = [1, 1]} : vector<8x32xf32> to vector<8x8xf32>
    %86 = arith.truncf %85 : vector<8x8xf32> to vector<8x8xbf16>
    %87 = vector.extract_strided_slice %42 {offsets = [0, 16], sizes = [16, 8], strides = [1, 1]} : vector<16x64xbf16> to vector<16x8xbf16>
    %88 = vector.extract_strided_slice %42 {offsets = [0, 48], sizes = [16, 8], strides = [1, 1]} : vector<16x64xbf16> to vector<16x8xbf16>
    %cst_37 = arith.constant dense<0.000000e+00> : vector<8x16xf32>
    %89 = tpu.matmul %86, %87, %cst_37 {dimension_numbers = #tpu.dot_dimension_numbers<[1], [1], [0], [0], [0, 0, 1, 0], [], []>} : vector<8x8xbf16>, vector<16x8xbf16>, vector<8x16xf32> -> vector<8x16xf32>
    %cst_38 = arith.constant 0.353553385 : f32
    %90 = vector.broadcast %cst_38 : f32 to vector<8x16xf32>
    %91 = arith.mulf %89, %90 : vector<8x16xf32>
    %cst_39 = arith.constant -1.000000e+30 : f32
    %92 = vector.broadcast %cst_39 : f32 to vector<8x16xf32>
    %93 = arith.select %41, %91, %92 : vector<8x16xi1>, vector<8x16xf32>
    %cst_40 = arith.constant dense<0xFF800000> : vector<8xf32>
    %94 = vector.multi_reduction <maximumf>, %93, %cst_40 [1] : vector<8x16xf32> to vector<8xf32>
    %95 = vector.shape_cast %94 : vector<8xf32> to vector<8x1xf32>
    %96 = vector.broadcast %95 : vector<8x1xf32> to vector<8x16xf32>
    %97 = arith.subf %93, %96 : vector<8x16xf32>
    %98 = math.exp %97 : vector<8x16xf32>
    %cst_41 = arith.constant dense<0.000000e+00> : vector<8xf32>
    %99 = vector.multi_reduction <add>, %98, %cst_41 [1] : vector<8x16xf32> to vector<8xf32>
    %100 = vector.shape_cast %99 : vector<8xf32> to vector<8x1xf32>
    %101 = tpu.reciprocal %100 {approx = true} : vector<8x1xf32> -> vector<8x1xf32>
    %102 = vector.broadcast %101 : vector<8x1xf32> to vector<8x16xf32>
    %103 = arith.mulf %98, %102 : vector<8x16xf32>
    %104 = arith.truncf %103 : vector<8x16xf32> to vector<8x16xbf16>
    %cst_42 = arith.constant dense<0.000000e+00> : vector<8x8xf32>
    %105 = tpu.matmul %104, %88, %cst_42 {dimension_numbers = #tpu.dot_dimension_numbers<[1], [0], [0], [1], [0, 0, 1, 1], [], []>} : vector<8x16xbf16>, vector<16x8xbf16>, vector<8x8xf32> -> vector<8x8xf32>
    %106 = vector.extract_strided_slice %36 {offsets = [0, 24], sizes = [8, 8], strides = [1, 1]} : vector<8x32xf32> to vector<8x8xf32>
    %107 = arith.truncf %106 : vector<8x8xf32> to vector<8x8xbf16>
    %108 = vector.extract_strided_slice %42 {offsets = [0, 24], sizes = [16, 8], strides = [1, 1]} : vector<16x64xbf16> to vector<16x8xbf16>
    %109 = vector.extract_strided_slice %42 {offsets = [0, 56], sizes = [16, 8], strides = [1, 1]} : vector<16x64xbf16> to vector<16x8xbf16>
    %cst_43 = arith.constant dense<0.000000e+00> : vector<8x16xf32>
    %110 = tpu.matmul %107, %108, %cst_43 {dimension_numbers = #tpu.dot_dimension_numbers<[1], [1], [0], [0], [0, 0, 1, 0], [], []>} : vector<8x8xbf16>, vector<16x8xbf16>, vector<8x16xf32> -> vector<8x16xf32>
    %cst_44 = arith.constant 0.353553385 : f32
    %111 = vector.broadcast %cst_44 : f32 to vector<8x16xf32>
    %112 = arith.mulf %110, %111 : vector<8x16xf32>
    %cst_45 = arith.constant -1.000000e+30 : f32
    %113 = vector.broadcast %cst_45 : f32 to vector<8x16xf32>
    %114 = arith.select %41, %112, %113 : vector<8x16xi1>, vector<8x16xf32>
    %cst_46 = arith.constant dense<0xFF800000> : vector<8xf32>
    %115 = vector.multi_reduction <maximumf>, %114, %cst_46 [1] : vector<8x16xf32> to vector<8xf32>
    %116 = vector.shape_cast %115 : vector<8xf32> to vector<8x1xf32>
    %117 = vector.broadcast %116 : vector<8x1xf32> to vector<8x16xf32>
    %118 = arith.subf %114, %117 : vector<8x16xf32>
    %119 = math.exp %118 : vector<8x16xf32>
    %cst_47 = arith.constant dense<0.000000e+00> : vector<8xf32>
    %120 = vector.multi_reduction <add>, %119, %cst_47 [1] : vector<8x16xf32> to vector<8xf32>
    %121 = vector.shape_cast %120 : vector<8xf32> to vector<8x1xf32>
    %122 = tpu.reciprocal %121 {approx = true} : vector<8x1xf32> -> vector<8x1xf32>
    %123 = vector.broadcast %122 : vector<8x1xf32> to vector<8x16xf32>
    %124 = arith.mulf %119, %123 : vector<8x16xf32>
    %125 = arith.truncf %124 : vector<8x16xf32> to vector<8x16xbf16>
    %cst_48 = arith.constant dense<0.000000e+00> : vector<8x8xf32>
    %126 = tpu.matmul %125, %109, %cst_48 {dimension_numbers = #tpu.dot_dimension_numbers<[1], [0], [0], [1], [0, 0, 1, 1], [], []>} : vector<8x16xbf16>, vector<16x8xbf16>, vector<8x8xf32> -> vector<8x8xf32>
    %127 = tpu.concatenate %63, %84, %105, %126 in 1 : vector<8x8xf32>, vector<8x8xf32>, vector<8x8xf32>, vector<8x8xf32> -> vector<8x32xf32>
    %128 = arith.truncf %127 : vector<8x32xf32> to vector<8x32xbf16>
    %c0_49 = arith.constant 0 : index
    %c0_50 = arith.constant 0 : index
    %129 = vector.load %arg11[%c0_49, %c0_50] : memref<32x32xbf16, #tpu.memory_space<vmem>>, vector<32x32xbf16>
    %cst_51 = arith.constant dense<0.000000e+00> : vector<8x32xf32>
    %130 = tpu.matmul %128, %129, %cst_51 {dimension_numbers = #tpu.dot_dimension_numbers<[1], [0], [0], [1], [0, 0, 1, 1], [], []>} : vector<8x32xbf16>, vector<32x32xbf16>, vector<8x32xf32> -> vector<8x32xf32>
    %131 = arith.addf %6, %130 : vector<8x32xf32>
    %c0_52 = arith.constant 0 : index
    %c0_53 = arith.constant 0 : index
    %132 = vector.load %arg12[%c0_52, %c0_53] : memref<1x32xf32, #tpu.memory_space<vmem>>, vector<1x32xf32>
    %133 = vector.broadcast %132 : vector<1x32xf32> to vector<8x32xf32>
    %134 = arith.addf %131, %133 : vector<8x32xf32>
    %c0_54 = arith.constant 0 : index
    %c0_55 = arith.constant 0 : index
    %135 = vector.load %arg13[%c0_54, %c0_55] : memref<1x32xf32, #tpu.memory_space<vmem>>, vector<1x32xf32>
    %c0_56 = arith.constant 0 : index
    %c0_57 = arith.constant 0 : index
    %136 = vector.load %arg14[%c0_56, %c0_57] : memref<1x32xf32, #tpu.memory_space<vmem>>, vector<1x32xf32>
    %cst_58 = arith.constant dense<0.000000e+00> : vector<8xf32>
    %137 = vector.multi_reduction <add>, %134, %cst_58 [1] : vector<8x32xf32> to vector<8xf32>
    %138 = vector.shape_cast %137 : vector<8xf32> to vector<8x1xf32>
    %cst_59 = arith.constant 3.200000e+01 : f32
    %139 = vector.broadcast %cst_59 : f32 to vector<8x1xf32>
    %140 = arith.divf %138, %139 : vector<8x1xf32>
    %141 = vector.broadcast %140 : vector<8x1xf32> to vector<8x32xf32>
    %142 = arith.subf %134, %141 : vector<8x32xf32>
    %143 = arith.mulf %142, %142 : vector<8x32xf32>
    %cst_60 = arith.constant dense<0.000000e+00> : vector<8xf32>
    %144 = vector.multi_reduction <add>, %143, %cst_60 [1] : vector<8x32xf32> to vector<8xf32>
    %145 = vector.shape_cast %144 : vector<8xf32> to vector<8x1xf32>
    %cst_61 = arith.constant 3.200000e+01 : f32
    %146 = vector.broadcast %cst_61 : f32 to vector<8x1xf32>
    %147 = arith.divf %145, %146 : vector<8x1xf32>
    %148 = vector.broadcast %140 : vector<8x1xf32> to vector<8x32xf32>
    %149 = arith.subf %134, %148 : vector<8x32xf32>
    %cst_62 = arith.constant 9.99999974E-6 : f32
    %150 = vector.broadcast %cst_62 : f32 to vector<8x1xf32>
    %151 = arith.addf %147, %150 : vector<8x1xf32>
    %152 = math.rsqrt %151 : vector<8x1xf32>
    %153 = vector.broadcast %152 : vector<8x1xf32> to vector<8x32xf32>
    %154 = arith.mulf %149, %153 : vector<8x32xf32>
    %155 = vector.broadcast %135 : vector<1x32xf32> to vector<8x32xf32>
    %156 = arith.mulf %154, %155 : vector<8x32xf32>
    %157 = vector.broadcast %136 : vector<1x32xf32> to vector<8x32xf32>
    %158 = arith.addf %156, %157 : vector<8x32xf32>
    %159 = arith.truncf %158 : vector<8x32xf32> to vector<8x32xbf16>
    %c0_63 = arith.constant 0 : index
    %c0_64 = arith.constant 0 : index
    %160 = vector.load %arg15[%c0_63, %c0_64] : memref<32x128xbf16, #tpu.memory_space<vmem>>, vector<32x128xbf16>
    %cst_65 = arith.constant dense<0.000000e+00> : vector<8x128xf32>
    %161 = tpu.matmul %159, %160, %cst_65 {dimension_numbers = #tpu.dot_dimension_numbers<[1], [0], [0], [1], [0, 0, 1, 1], [], []>} : vector<8x32xbf16>, vector<32x128xbf16>, vector<8x128xf32> -> vector<8x128xf32>
    %c0_66 = arith.constant 0 : index
    %c0_67 = arith.constant 0 : index
    %162 = vector.load %arg16[%c0_66, %c0_67] : memref<1x128xf32, #tpu.memory_space<vmem>>, vector<1x128xf32>
    %163 = vector.broadcast %162 : vector<1x128xf32> to vector<8x128xf32>
    %164 = arith.addf %161, %163 : vector<8x128xf32>
    %165 = arith.mulf %164, %164 : vector<8x128xf32>
    %166 = arith.mulf %164, %165 : vector<8x128xf32>
    %cst_68 = arith.constant 4.471500e-02 : f32
    %167 = vector.broadcast %cst_68 : f32 to vector<8x128xf32>
    %168 = arith.mulf %167, %166 : vector<8x128xf32>
    %169 = arith.addf %164, %168 : vector<8x128xf32>
    %cst_69 = arith.constant 0.797884583 : f32
    %170 = vector.broadcast %cst_69 : f32 to vector<8x128xf32>
    %171 = arith.mulf %170, %169 : vector<8x128xf32>
    %172 = math.tanh %171 : vector<8x128xf32>
    %cst_70 = arith.constant 1.000000e+00 : f32
    %173 = vector.broadcast %cst_70 : f32 to vector<8x128xf32>
    %174 = arith.addf %173, %172 : vector<8x128xf32>
    %cst_71 = arith.constant 5.000000e-01 : f32
    %175 = vector.broadcast %cst_71 : f32 to vector<8x128xf32>
    %176 = arith.mulf %175, %174 : vector<8x128xf32>
    %177 = arith.mulf %164, %176 : vector<8x128xf32>
    %178 = arith.truncf %177 : vector<8x128xf32> to vector<8x128xbf16>
    %c0_72 = arith.constant 0 : index
    %c0_73 = arith.constant 0 : index
    %179 = vector.load %arg17[%c0_72, %c0_73] : memref<128x32xbf16, #tpu.memory_space<vmem>>, vector<128x32xbf16>
    %cst_74 = arith.constant dense<0.000000e+00> : vector<8x32xf32>
    %180 = tpu.matmul %178, %179, %cst_74 {dimension_numbers = #tpu.dot_dimension_numbers<[1], [0], [0], [1], [0, 0, 1, 1], [], []>} : vector<8x128xbf16>, vector<128x32xbf16>, vector<8x32xf32> -> vector<8x32xf32>
    %181 = arith.addf %134, %180 : vector<8x32xf32>
    %c0_75 = arith.constant 0 : index
    %c0_76 = arith.constant 0 : index
    %182 = vector.load %arg18[%c0_75, %c0_76] : memref<1x32xf32, #tpu.memory_space<vmem>>, vector<1x32xf32>
    %183 = vector.broadcast %182 : vector<1x32xf32> to vector<8x32xf32>
    %184 = arith.addf %181, %183 : vector<8x32xf32>
    %185 = arith.truncf %184 : vector<8x32xf32> to vector<8x32xbf16>
    %c0_77 = arith.constant 0 : index
    %c0_78 = arith.constant 0 : index
    %186 = vector.load %arg19[%c0_77, %c0_78] : memref<32x32xbf16, #tpu.memory_space<vmem>>, vector<32x32xbf16>
    %cst_79 = arith.constant dense<0.000000e+00> : vector<8x32xf32>
    %187 = tpu.matmul %185, %186, %cst_79 {dimension_numbers = #tpu.dot_dimension_numbers<[1], [0], [0], [1], [0, 0, 1, 1], [], []>} : vector<8x32xbf16>, vector<32x32xbf16>, vector<8x32xf32> -> vector<8x32xf32>
    %c0_80 = arith.constant 0 : index
    %c0_81 = arith.constant 0 : index
    %188 = vector.load %arg20[%c0_80, %c0_81] : memref<1x32xf32, #tpu.memory_space<vmem>>, vector<1x32xf32>
    %189 = vector.broadcast %188 : vector<1x32xf32> to vector<8x32xf32>
    %190 = arith.addf %187, %189 : vector<8x32xf32>
    %c0_82 = arith.constant 0 : index
    %c0_83 = arith.constant 0 : index
    %191 = vector.load %arg21[%c0_82, %c0_83] : memref<8x32xf32, #tpu.memory_space<vmem>>, vector<8x32xf32>
    tpu.vector_store %arg21[%c0_82, %c0_83], %190 {strides = array<i32>} : memref<8x32xf32, #tpu.memory_space<vmem>>, vector<8x32xf32>,
    return
  }
  func.func @transform_0(%arg0: i32) -> (i32, i32) {
    %c0_i32 = arith.constant 0 : i32
    %c0_i32_0 = arith.constant 0 : i32
    return %arg0, %c0_i32 : i32, i32
  }
  func.func @transform_1(%arg0: i32) -> (i32, i32) {
    %c0_i32 = arith.constant 0 : i32
    %c0_i32_0 = arith.constant 0 : i32
    return %arg0, %c0_i32 : i32, i32
  }
  func.func @transform_2(%arg0: i32) -> (i32, i32) {
    %c0_i32 = arith.constant 0 : i32
    %c0_i32_0 = arith.constant 0 : i32
    %c0_i32_1 = arith.constant 0 : i32
    return %c0_i32, %c0_i32_0 : i32, i32
  }
  func.func @transform_3(%arg0: i32) -> (i32, i32) {
    %c0_i32 = arith.constant 0 : i32
    %c0_i32_0 = arith.constant 0 : i32
    %c0_i32_1 = arith.constant 0 : i32
    return %c0_i32, %c0_i32_0 : i32, i32
  }
  func.func @transform_4(%arg0: i32) -> (i32, i32) {
    %c0_i32 = arith.constant 0 : i32
    %c0_i32_0 = arith.constant 0 : i32
    %c0_i32_1 = arith.constant 0 : i32
    return %c0_i32, %c0_i32_0 : i32, i32
  }
  func.func @transform_5(%arg0: i32) -> (i32, i32) {
    %c0_i32 = arith.constant 0 : i32
    %c0_i32_0 = arith.constant 0 : i32
    %c0_i32_1 = arith.constant 0 : i32
    return %c0_i32, %c0_i32_0 : i32, i32
  }
  func.func @transform_6(%arg0: i32) -> (i32, i32) {
    %c0_i32 = arith.constant 0 : i32
    %c0_i32_0 = arith.constant 0 : i32
    %c0_i32_1 = arith.constant 0 : i32
    return %c0_i32, %c0_i32_0 : i32, i32
  }
  func.func @transform_7(%arg0: i32) -> (i32, i32) {
    %c0_i32 = arith.constant 0 : i32
    %c0_i32_0 = arith.constant 0 : i32
    %c0_i32_1 = arith.constant 0 : i32
    return %c0_i32, %c0_i32_0 : i32, i32
  }
  func.func @transform_8(%arg0: i32) -> (i32, i32) {
    %c0_i32 = arith.constant 0 : i32
    %c0_i32_0 = arith.constant 0 : i32
    %c0_i32_1 = arith.constant 0 : i32
    return %c0_i32, %c0_i32_0 : i32, i32
  }
  func.func @transform_9(%arg0: i32) -> (i32, i32) {
    %c0_i32 = arith.constant 0 : i32
    %c0_i32_0 = arith.constant 0 : i32
    %c0_i32_1 = arith.constant 0 : i32
    return %c0_i32, %c0_i32_0 : i32, i32
  }
  func.func @transform_10(%arg0: i32) -> (i32, i32) {
    %c0_i32 = arith.constant 0 : i32
    %c0_i32_0 = arith.constant 0 : i32
    %c0_i32_1 = arith.constant 0 : i32
    return %c0_i32, %c0_i32_0 : i32, i32
  }
  func.func @transform_11(%arg0: i32) -> (i32, i32) {
    %c0_i32 = arith.constant 0 : i32
    %c0_i32_0 = arith.constant 0 : i32
    %c0_i32_1 = arith.constant 0 : i32
    return %c0_i32, %c0_i32_0 : i32, i32
  }
  func.func @transform_12(%arg0: i32) -> (i32, i32) {
    %c0_i32 = arith.constant 0 : i32
    %c0_i32_0 = arith.constant 0 : i32
    %c0_i32_1 = arith.constant 0 : i32
    return %c0_i32, %c0_i32_0 : i32, i32
  }
  func.func @transform_13(%arg0: i32) -> (i32, i32) {
    %c0_i32 = arith.constant 0 : i32
    %c0_i32_0 = arith.constant 0 : i32
    %c0_i32_1 = arith.constant 0 : i32
    return %c0_i32, %c0_i32_0 : i32, i32
  }
  func.func @transform_14(%arg0: i32) -> (i32, i32) {
    %c0_i32 = arith.constant 0 : i32
    %c0_i32_0 = arith.constant 0 : i32
    %c0_i32_1 = arith.constant 0 : i32
    return %c0_i32, %c0_i32_0 : i32, i32
  }
  func.func @transform_15(%arg0: i32) -> (i32, i32) {
    %c0_i32 = arith.constant 0 : i32
    %c0_i32_0 = arith.constant 0 : i32
    %c0_i32_1 = arith.constant 0 : i32
    return %c0_i32, %c0_i32_0 : i32, i32
  }
  func.func @transform_16(%arg0: i32) -> (i32, i32) {
    %c0_i32 = arith.constant 0 : i32
    %c0_i32_0 = arith.constant 0 : i32
    %c0_i32_1 = arith.constant 0 : i32
    return %c0_i32, %c0_i32_0 : i32, i32
  }
  func.func @transform_17(%arg0: i32) -> (i32, i32) {
    %c0_i32 = arith.constant 0 : i32
    %c0_i32_0 = arith.constant 0 : i32
    %c0_i32_1 = arith.constant 0 : i32
    return %c0_i32, %c0_i32_0 : i32, i32
  }
  func.func @transform_18(%arg0: i32) -> (i32, i32) {
    %c0_i32 = arith.constant 0 : i32
    %c0_i32_0 = arith.constant 0 : i32
    %c0_i32_1 = arith.constant 0 : i32
    return %c0_i32, %c0_i32_0 : i32, i32
  }
  func.func @transform_19(%arg0: i32) -> (i32, i32) {
    %c0_i32 = arith.constant 0 : i32
    %c0_i32_0 = arith.constant 0 : i32
    %c0_i32_1 = arith.constant 0 : i32
    return %c0_i32, %c0_i32_0 : i32, i32
  }
  func.func @transform_20(%arg0: i32) -> (i32, i32) {
    %c0_i32 = arith.constant 0 : i32
    %c0_i32_0 = arith.constant 0 : i32
    return %arg0, %c0_i32 : i32, i32
  }
}

module attributes {stable_mosaic.version = 11 : i64} {
  func.func @_source_kv_kernel(%arg0: i32, %arg1: memref<16x8xf32, #tpu.memory_space<vmem>>, %arg2: memref<8x32xbf16, #tpu.memory_space<vmem>>, %arg3: memref<1x32xf32, #tpu.memory_space<vmem>>, %arg4: memref<1x32xf32, #tpu.memory_space<vmem>>, %arg5: memref<1x32xf32, #tpu.memory_space<vmem>>, %arg6: memref<32x64xbf16, #tpu.memory_space<vmem>>, %arg7: memref<1x64xf32, #tpu.memory_space<vmem>>, %arg8: memref<16x64xbf16, #tpu.memory_space<vmem>>) attributes {dimension_semantics = [#tpu.dimension_semantics<parallel>], iteration_bounds = array<i64: 1>, scalar_prefetch = 0 : i64, scratch_operands = 0 : i64, tpu.core_type = #tpu.core_type<tc>, window_params = [{transform_indices = @transform_0, window_bounds = array<i64: 16, 8>}, {pipeline_mode = #tpu.pipeline_mode<synchronous>, transform_indices = @transform_1, window_bounds = array<i64: 8, 32>}, {pipeline_mode = #tpu.pipeline_mode<synchronous>, transform_indices = @transform_2, window_bounds = array<i64: 1, 32>}, {pipeline_mode = #tpu.pipeline_mode<synchronous>, transform_indices = @transform_3, window_bounds = array<i64: 1, 32>}, {pipeline_mode = #tpu.pipeline_mode<synchronous>, transform_indices = @transform_4, window_bounds = array<i64: 1, 32>}, {pipeline_mode = #tpu.pipeline_mode<synchronous>, transform_indices = @transform_5, window_bounds = array<i64: 32, 64>}, {pipeline_mode = #tpu.pipeline_mode<synchronous>, transform_indices = @transform_6, window_bounds = array<i64: 1, 64>}, {transform_indices = @transform_7, window_bounds = array<i64: 16, 64>}]} {
    %c0 = arith.constant 0 : index
    %c0_0 = arith.constant 0 : index
    %0 = vector.load %arg1[%c0, %c0_0] : memref<16x8xf32, #tpu.memory_space<vmem>>, vector<16x8xf32>
    %1 = arith.truncf %0 : vector<16x8xf32> to vector<16x8xbf16>
    %c0_1 = arith.constant 0 : index
    %c0_2 = arith.constant 0 : index
    %2 = vector.load %arg2[%c0_1, %c0_2] : memref<8x32xbf16, #tpu.memory_space<vmem>>, vector<8x32xbf16>
    %cst = arith.constant dense<0.000000e+00> : vector<16x32xf32>
    %3 = tpu.matmul %1, %2, %cst {dimension_numbers = #tpu.dot_dimension_numbers<[1], [0], [0], [1], [0, 0, 1, 1], [], []>} : vector<16x8xbf16>, vector<8x32xbf16>, vector<16x32xf32> -> vector<16x32xf32>
    %c0_3 = arith.constant 0 : index
    %c0_4 = arith.constant 0 : index
    %4 = vector.load %arg3[%c0_3, %c0_4] : memref<1x32xf32, #tpu.memory_space<vmem>>, vector<1x32xf32>
    %5 = vector.broadcast %4 : vector<1x32xf32> to vector<16x32xf32>
    %6 = arith.addf %3, %5 : vector<16x32xf32>
    %c0_5 = arith.constant 0 : index
    %c0_6 = arith.constant 0 : index
    %7 = vector.load %arg4[%c0_5, %c0_6] : memref<1x32xf32, #tpu.memory_space<vmem>>, vector<1x32xf32>
    %c0_7 = arith.constant 0 : index
    %c0_8 = arith.constant 0 : index
    %8 = vector.load %arg5[%c0_7, %c0_8] : memref<1x32xf32, #tpu.memory_space<vmem>>, vector<1x32xf32>
    %cst_9 = arith.constant dense<0.000000e+00> : vector<16xf32>
    %9 = vector.multi_reduction <add>, %6, %cst_9 [1] : vector<16x32xf32> to vector<16xf32>
    %10 = vector.shape_cast %9 : vector<16xf32> to vector<16x1xf32>
    %cst_10 = arith.constant 3.200000e+01 : f32
    %11 = vector.broadcast %cst_10 : f32 to vector<16x1xf32>
    %12 = arith.divf %10, %11 : vector<16x1xf32>
    %13 = vector.broadcast %12 : vector<16x1xf32> to vector<16x32xf32>
    %14 = arith.subf %6, %13 : vector<16x32xf32>
    %15 = arith.mulf %14, %14 : vector<16x32xf32>
    %cst_11 = arith.constant dense<0.000000e+00> : vector<16xf32>
    %16 = vector.multi_reduction <add>, %15, %cst_11 [1] : vector<16x32xf32> to vector<16xf32>
    %17 = vector.shape_cast %16 : vector<16xf32> to vector<16x1xf32>
    %cst_12 = arith.constant 3.200000e+01 : f32
    %18 = vector.broadcast %cst_12 : f32 to vector<16x1xf32>
    %19 = arith.divf %17, %18 : vector<16x1xf32>
    %20 = vector.broadcast %12 : vector<16x1xf32> to vector<16x32xf32>
    %21 = arith.subf %6, %20 : vector<16x32xf32>
    %cst_13 = arith.constant 9.99999974E-6 : f32
    %22 = vector.broadcast %cst_13 : f32 to vector<16x1xf32>
    %23 = arith.addf %19, %22 : vector<16x1xf32>
    %24 = math.rsqrt %23 : vector<16x1xf32>
    %25 = vector.broadcast %24 : vector<16x1xf32> to vector<16x32xf32>
    %26 = arith.mulf %21, %25 : vector<16x32xf32>
    %27 = vector.broadcast %7 : vector<1x32xf32> to vector<16x32xf32>
    %28 = arith.mulf %26, %27 : vector<16x32xf32>
    %29 = vector.broadcast %8 : vector<1x32xf32> to vector<16x32xf32>
    %30 = arith.addf %28, %29 : vector<16x32xf32>
    %31 = arith.truncf %30 : vector<16x32xf32> to vector<16x32xbf16>
    %c0_14 = arith.constant 0 : index
    %c0_15 = arith.constant 0 : index
    %32 = vector.load %arg6[%c0_14, %c0_15] : memref<32x64xbf16, #tpu.memory_space<vmem>>, vector<32x64xbf16>
    %cst_16 = arith.constant dense<0.000000e+00> : vector<16x64xf32>
    %33 = tpu.matmul %31, %32, %cst_16 {dimension_numbers = #tpu.dot_dimension_numbers<[1], [0], [0], [1], [0, 0, 1, 1], [], []>} : vector<16x32xbf16>, vector<32x64xbf16>, vector<16x64xf32> -> vector<16x64xf32>
    %c0_17 = arith.constant 0 : index
    %c0_18 = arith.constant 0 : index
    %34 = vector.load %arg7[%c0_17, %c0_18] : memref<1x64xf32, #tpu.memory_space<vmem>>, vector<1x64xf32>
    %35 = vector.broadcast %34 : vector<1x64xf32> to vector<16x64xf32>
    %36 = arith.addf %33, %35 : vector<16x64xf32>
    %37 = arith.truncf %36 : vector<16x64xf32> to vector<16x64xbf16>
    %c0_19 = arith.constant 0 : index
    %c0_20 = arith.constant 0 : index
    %38 = vector.load %arg8[%c0_19, %c0_20] : memref<16x64xbf16, #tpu.memory_space<vmem>>, vector<16x64xbf16>
    tpu.vector_store %arg8[%c0_19, %c0_20], %37 {strides = array<i32>} : memref<16x64xbf16, #tpu.memory_space<vmem>>, vector<16x64xbf16>,
    return
  }
  func.func @transform_0(%arg0: i32) -> (i32, i32) {
    %c0_i32 = arith.constant 0 : i32
    %c0_i32_0 = arith.constant 0 : i32
    return %arg0, %c0_i32 : i32, i32
  }
  func.func @transform_1(%arg0: i32) -> (i32, i32) {
    %c0_i32 = arith.constant 0 : i32
    %c0_i32_0 = arith.constant 0 : i32
    %c0_i32_1 = arith.constant 0 : i32
    return %c0_i32, %c0_i32_0 : i32, i32
  }
  func.func @transform_2(%arg0: i32) -> (i32, i32) {
    %c0_i32 = arith.constant 0 : i32
    %c0_i32_0 = arith.constant 0 : i32
    %c0_i32_1 = arith.constant 0 : i32
    return %c0_i32, %c0_i32_0 : i32, i32
  }
  func.func @transform_3(%arg0: i32) -> (i32, i32) {
    %c0_i32 = arith.constant 0 : i32
    %c0_i32_0 = arith.constant 0 : i32
    %c0_i32_1 = arith.constant 0 : i32
    return %c0_i32, %c0_i32_0 : i32, i32
  }
  func.func @transform_4(%arg0: i32) -> (i32, i32) {
    %c0_i32 = arith.constant 0 : i32
    %c0_i32_0 = arith.constant 0 : i32
    %c0_i32_1 = arith.constant 0 : i32
    return %c0_i32, %c0_i32_0 : i32, i32
  }
  func.func @transform_5(%arg0: i32) -> (i32, i32) {
    %c0_i32 = arith.constant 0 : i32
    %c0_i32_0 = arith.constant 0 : i32
    %c0_i32_1 = arith.constant 0 : i32
    return %c0_i32, %c0_i32_0 : i32, i32
  }
  func.func @transform_6(%arg0: i32) -> (i32, i32) {
    %c0_i32 = arith.constant 0 : i32
    %c0_i32_0 = arith.constant 0 : i32
    %c0_i32_1 = arith.constant 0 : i32
    return %c0_i32, %c0_i32_0 : i32, i32
  }
  func.func @transform_7(%arg0: i32) -> (i32, i32) {
    %c0_i32 = arith.constant 0 : i32
    %c0_i32_0 = arith.constant 0 : i32
    return %arg0, %c0_i32 : i32, i32
  }
}

</mosaic_0001>

<bundles_post_ra>
// kernel: cross_attention_tokeniser_forward.2
= control target key start
LH: loop header
LB: loop body
LE: loop exit
PB: predicated region body
PF: predicated region fallthrough
CT: control target
= control target key end

     0   :  { %vm39_vm0 = vcmask 1043456   ;;  %vm35_vm1 = vcmask 64512   ;;  %vm59_vm2 = vcmask 261120   ;;  %v191_v12 = vmov 32.0   ;;  %s270_s1 = inlined_call_operand.vmem [shape: bf16[8,32], index: 1, kind: input, shape index: {}]   ;;  %s271_s0 = inlined_call_operand.vmem [shape: f32[16,8], index: 0, kind: input, shape index: {}]   ;;  %s272_s2 = inlined_call_operand.vmem [shape: f32[1,32], index: 2, kind: input, shape index: {}]   ;;  %s273_s3 = inlined_call_operand.vmem [shape: f32[1,32], index: 3, kind: input, shape index: {}]   ;;  %s274_s4 = inlined_call_operand.vmem [shape: f32[1,32], index: 4, kind: input, shape index: {}]   ;;  %s275_s6 = inlined_call_operand.vmem [shape: f32[1,64], index: 6, kind: input, shape index: {}]   ;;  %s276_s5 = inlined_call_operand.vmem [shape: bf16[32,64], index: 5, kind: input, shape index: {}]   ;;  %s277_s7 = inlined_call_operand.vmem [shape: bf16[16,64], index: 7, kind: output, shape index: {}]  }
   0x1   :  { %v30_v0 = vld [vmem:[%s270_s1] sm:$0xf]  ;;  %v28_v2 = vld [vmem:[%s271_s0 + $0x8] sm:$0xff]  ;;  %185 = vrcp.f32 %v191_v12  ;;  %vm161_vm10 = vcmask 519168  }
   0x2   :  { %v27_v1 = vld [vmem:[%s271_s0] sm:$0xff]  ;;  %v41_v3 = vsel %vm39_vm0, %v30_v0, 0  ;;  %v179_v29 = vld [vmem:[%s276_s5 + $0x8] sm:$0xff] }
   0x3   :  { %v29_v4 = vpack.c.bf16 %v28_v2, %v27_v1  ;;  %50 = vmatpush.bf16.msra.mxu0 %v41_v3  ;;  %v181_v5 = vld [vmem:[%s272_s2] ss:$0 sm:$0xff]  ;;  %151 = vmatpush.bf16.msra.mxu1 %v179_v29 }
   0x4   :  { %v178_v31 = vld [vmem:[%s276_s5] sm:$0xff] }
   0x5   :  { %v182_v50 = vld [vmem:[%s273_s3] ss:$0 sm:$0xff] }
   0x6   :  { %168 = vmatmul.msk.bf16.vlgmr.msra.gmra.mxu0 %vm35_vm1, %v29_v4  ;;  %v183_v55 = vld [vmem:[%s274_s4] ss:$0 sm:$0xff] }
   0x7   :  { %v186_v13 = vpop.eup %185  ;;  %152 = vmatpush.bf16.msra.mxu1 %v178_v31  ;;  %v184_v60 = vld [vmem:[%s275_s6] ss:$0 sm:$0xff] }
   0x8   :  { %v67_v14 = vmul.f32 32.0, %v186_v13  ;;  %vm71_vm3 = vweird.f32 %v186_v13 }
   0xa   :  { %v68_v15 = vsub.f32 1.0, %v67_v14 }
   0xc   :  { %v69_v16 = vmul.f32 %v186_v13, %v68_v15 }
   0xe   :  { %v70_v17 = vadd.f32 %v186_v13, %v69_v16 }
  0x10   :  { %v72_v18 = vsel %vm71_vm3, %v186_v13, %v70_v17 }
  0x83   :  { %v52_v6 = vpop.f32.mrf.mxu0 }
  0x84   :  { %v53_v7 = vadd.f32 %v181_v5, %v52_v6 }
  0x86   :  { %v60_v8 = vsel %vm59_vm2, %v53_v7, 0.0 }
  0x87   :  { %61 = vadd.xlane.f32.xlu0 %v60_v8 }
  0x8b   :  { %v54_v9 = vpop.f32.mrf.mxu0 }
  0x8c   :  { %v55_v10 = vadd.f32 %v181_v5, %v54_v9 }
  0x8e   :  { %v63_v11 = vsel %vm59_vm2, %v55_v10, 0.0 }
  0x8f   :  { %64 = vadd.xlane.f32.xlu0 %v63_v11 }
  0xfa   :  { %v62_v19 = vpop.xlane.xlu0 %61 }
  0xfb   :  { %v73_v20 = vmul.f32 %v72_v18, %v62_v19 }
  0xfd   :  { %v75_v21 = vsub.f32 %v53_v7, %v73_v20 }
  0xff   :  { %v77_v22 = vmul.f32 %v75_v21, %v75_v21 }
 0x101   :  { %v79_v23 = vsel %vm59_vm2, %v77_v22, 0.0 }
 0x102   :  { %80 = vadd.xlane.f32.xlu1 %v79_v23  ;;  %v65_v24 = vpop.xlane.xlu0 %64 }
 0x103   :  { %v74_v25 = vmul.f32 %v72_v18, %v65_v24 }
 0x105   :  { %v76_v26 = vsub.f32 %v55_v10, %v74_v25 }
 0x107   :  { %v78_v27 = vmul.f32 %v76_v26, %v76_v26 }
 0x109   :  { %v82_v28 = vsel %vm59_vm2, %v78_v27, 0.0 }
 0x10a   :  { %83 = vadd.xlane.f32.xlu1 %v82_v28 }
 0x175   :  { %v81_v30 = vpop.xlane.xlu1 %80 }
 0x176   :  { %v85_v32 = vmul.f32 %v81_v30, %v72_v18 }
 0x178   :  { %v87_v33 = vadd.f32 1e-05, %v85_v32 }
 0x17a   :  { %187 = vrsqrt.f32 %v87_v33  ;;  %vm95_vm5 = vweird.f32 %v87_v33 }
 0x17d   :  { %v84_v34 = vpop.xlane.xlu1 %83 }
 0x17e   :  { %v86_v35 = vmul.f32 %v84_v34, %v72_v18 }
 0x180   :  { %v188_v36 = vpop.eup %187  ;;  %v88_v37 = vadd.f32 1e-05, %v86_v35 }
 0x181   :  { %v90_v38 = vmul.f32 %v188_v36, %v87_v33  ;;  %vm96_vm4 = vweird.f32 %v188_v36 }
 0x182   :  { %189 = vrsqrt.f32 %v88_v37  ;;  %vm97_vm6 = vmor %vm95_vm5, %vm96_vm4  ;;  %vm105_vm8 = vweird.f32 %v88_v37 }
 0x183   :  { %v91_v39 = vmul.f32 %v188_v36, %v90_v38 }
 0x185   :  { %v92_v40 = vmul.f32 0.5, %v91_v39 }
 0x187   :  { %v93_v41 = vsub.f32 1.5, %v92_v40 }
 0x188   :  { %v190_v42 = vpop.eup %189 }
 0x189   :  { %v94_v43 = vmul.f32 %v188_v36, %v93_v41  ;;  %v100_v44 = vmul.f32 %v190_v42, %v88_v37  ;;  %vm106_vm7 = vweird.f32 %v190_v42 }
 0x18a   :  { %vm107_vm9 = vmor %vm105_vm8, %vm106_vm7 }
 0x18b   :  { %v101_v45 = vmul.f32 %v190_v42, %v100_v44  ;;  %v98_v46 = vsel %vm97_vm6, %v188_v36, %v94_v43 }
 0x18c   :  { %v109_v49 = vmul.f32 %v98_v46, %v75_v21 }
 0x18d   :  { %v102_v47 = vmul.f32 0.5, %v101_v45 }
 0x18e   :  { %v114_v54 = vmul.f32 %v182_v50, %v109_v49 }
 0x18f   :  { %v103_v48 = vsub.f32 1.5, %v102_v47 }
 0x190   :  { %v119_v57 = vadd.f32 %v183_v55, %v114_v54 }
 0x191   :  { %v104_v51 = vmul.f32 %v190_v42, %v103_v48 }
 0x193   :  { %v108_v52 = vsel %vm107_vm9, %v190_v42, %v104_v51 }
 0x194   :  { %v110_v53 = vmul.f32 %v108_v52, %v76_v26 }
 0x196   :  { %v115_v56 = vmul.f32 %v182_v50, %v110_v53 }
 0x198   :  { %v120_v58 = vadd.f32 %v183_v55, %v115_v56 }
 0x19a   :  { %v121_v59 = vpack.c.bf16 %v120_v58, %v119_v57 }
 0x19c   :  { %177 = vmatmul.msk.bf16.vlgmr.msra.gmra.mxu1 %vm59_vm2, %v121_v59 }
 0x219   :  { %v154_v61 = vpop.f32.mrf.mxu1 }
 0x21a   :  { %v155_v62 = vadd.f32 %v184_v60, %v154_v61 }
 0x21c   :  { %v159_v63 = vpack.c.bf16 %v155_v62, %v155_v62 }
 0x21e   :  { %162 = vst.msk [vmem:[%s277_s7] sm:$0xf] %vm161_vm10, %v159_v63 }
 0x221   :  { %v156_v0 = vpop.f32.mrf.mxu1 }
 0x222   :  { %v157_v1 = vadd.f32 %v184_v60, %v156_v0 }
 0x224   :  { %v160_v2 = vpack.c.bf16 %v157_v1, %v157_v1 }
 0x226   :  { %163 = vst.msk [vmem:[%s277_s7 + $0x4] sm:$0xf] %vm161_vm10, %v160_v2 }

// kernel: cross_attention_tokeniser_forward.3
= control target key start
LH: loop header
LB: loop body
LE: loop exit
PB: predicated region body
PF: predicated region fallthrough
CT: control target
= control target key end

     0   :  { %s1132_s0 = inlined_call_operand.vmem [shape: f32[8,8], index: 0, kind: input, shape index: {}]   ;;  %s1133_s1 = inlined_call_operand.vmem [shape: s32[8,1], index: 1, kind: input, shape index: {}]   ;;  %s1134_s2 = inlined_call_operand.vmem [shape: s32[1,16], index: 2, kind: input, shape index: {}]   ;;  %s1135_s3 = inlined_call_operand.vmem [shape: bf16[16,64], index: 3, kind: input, shape index: {}]   ;;  %s1136_s4 = inlined_call_operand.vmem [shape: bf16[8,32], index: 4, kind: input, shape index: {}]   ;;  %s1137_s5 = inlined_call_operand.vmem [shape: f32[1,32], index: 5, kind: input, shape index: {}]   ;;  %s1138_s6 = inlined_call_operand.vmem [shape: f32[1,32], index: 6, kind: input, shape index: {}, may-alias: {6,12}]   ;;  %s1139_s7 = inlined_call_operand.vmem [shape: f32[1,32], index: 7, kind: input, shape index: {}, may-alias: {7,13}]   ;;  %s1140_s8 = inlined_call_operand.vmem [shape: bf16[32,32], index: 8, kind: input, shape index: {}]   ;;  %s1141_s9 = inlined_call_operand.vmem [shape: f32[1,32], index: 9, kind: input, shape index: {}]   ;;  %s1142_s10 = inlined_call_operand.vmem [shape: bf16[32,32], index: 10, kind: input, shape index: {}]   ;;  %s1143_s11 = inlined_call_operand.vmem [shape: f32[1,32], index: 11, kind: input, shape index: {}]   ;;  %s1144_s12 = inlined_call_operand.vmem [shape: f32[1,32], index: 12, kind: input, shape index: {}, may-alias: {6,12}]   ;;  %s1145_s13 = inlined_call_operand.vmem [shape: f32[1,32], index: 13, kind: input, shape index: {}, may-alias: {7,13}]   ;;  %s1146_s14 = inlined_call_operand.vmem [shape: bf16[32,128], index: 14, kind: input, shape index: {}]   ;;  %s1147_s15 = inlined_call_operand.vmem [shape: f32[1,128], index: 15, kind: input, shape index: {}]   ;;  %s1148_s16 = inlined_call_operand.vmem [shape: bf16[128,32], index: 16, kind: input, shape index: {}]   ;;  %s1149_s17 = inlined_call_operand.vmem [shape: f32[1,32], index: 17, kind: input, shape index: {}]   ;;  %s1150_s18 = inlined_call_operand.vmem [shape: bf16[32,32], index: 18, kind: input, shape index: {}]   ;;  %s1151_s19 = inlined_call_operand.vmem [shape: f32[1,32], index: 19, kind: input, shape index: {}]   ;;  %s1152_s20 = inlined_call_operand.hbm [shape: f32[8,32], index: 20, kind: output, shape index: {}]  }
   0x1   :  { %1153 = sst [smem:[#allocation5_spill]] %s1132_s0 }
   0x2   :  { %1154 = sst [smem:[#allocation6_spill]] %s1133_s1 }
   0x3   :  { %1155 = sst [smem:[#allocation7_spill]] %s1134_s2 }
   0x4   :  { %1156 = sst [smem:[#allocation8_spill]] %s1135_s3 }
   0x5   :  { %1157 = sst [smem:[#allocation9_spill]] %s1136_s4 }
   0x6   :  { %s1158_s23 = sld [smem:[#allocation9_spill]]  ;;  %vm78_vm0 = vcmask 1043456   ;;  %vm74_vm1 = vcmask 64512  }
   0x7   :  { %s1159_s25 = sld [smem:[#allocation5_spill]] }
   0xc   :  { %v69_v0 = vld [vmem:[%s1158_s23] sm:$0xf] }
   0xd   :  { %v67_v1 = vld [vmem:[%s1159_s25] sm:$0xff]  ;;  %v80_v2 = vsel %vm78_vm0, %v69_v0, 0 }
   0xe   :  { %v68_v3 = vpack.c.bf16 %v67_v1, %v67_v1  ;;  %89 = vmatpush.bf16.msra.mxu1 %v80_v2 }
  0x11   :  { %680 = vmatmul.msk.bf16.vlgmr.msra.gmra.mxu1 %vm74_vm1, %v68_v3 }
  0x12   :  { %25 = vsyncpa [#allocation3], 0  ;;  %v793_v4 = vld [vmem:[%s1137_s5] ss:$0 sm:$0xff]  ;;  %vm97_vm2 = vcmask 261120   ;;  %v854_v9 = vmov 32.0  }
  0x13   :  { %804 = vrcp.f32 %v854_v9  ;;  %v762_v21 = vld [vmem:[%s1140_s8 + $0x8] sm:$0xff]  ;;  %v761_v22 = vld [vmem:[%s1140_s8] sm:$0xff]  ;;  %s1160_s0 = sld [smem:[#allocation8_spill]]  ;;  %s855_s21 = smov 120   ;;  %v858_v44 = vmov 0   ;;  %vm208_vm8 = vcmask 130048  }
  0x14   :  { %165 = vmatpush.bf16.msrb.mxu1 %v762_v21  ;;  %v794_v34 = vld [vmem:[%s1138_s6] ss:$0 sm:$0xff]  ;;  %s856_s24 = smov 112   ;;  %s857_s2 = smov 104   ;;  %791 = vset.pattern.permute.xlu2 %v858_v44  ;;  %vm423_vm9 = vcmask 195584  }
  0x15   :  { %v795_v37 = vld [vmem:[%s1139_s7] ss:$0 sm:$0xff]  ;;  %s1161_s6 = sld [smem:[#allocation6_spill]]  ;;  %792 = vset.pattern.permute.xlu0 %v858_v44  ;;  %s859_s28 = smov 88  }
  0x16   :  { %v796_v47 = vld [vmem:[%s1141_s9] ss:$0 sm:$0xff]  ;;  %s1162_s27 = sld [smem:[#allocation7_spill]]  ;;  %s860_s4 = smov 72  }
  0x17   :  { %s861_s29 = smov 96   ;;  %s862_s30 = smov 80  }
  0x18   :  { %166 = vmatpush.bf16.msrb.mxu1 %v761_v22  ;;  %s865_s8 = smov 24  }
  0x19   :  { %v805_v10 = vpop.eup %804  ;;  %v1000_v23 = vld [vmem:[%s1160_s0] sm:$0xff]  ;;  %s863_s0 = smov 8  }
  0x1a   :  { %v102_v11 = vmul.f32 32.0, %v805_v10  ;;  %vm106_vm3 = vweird.f32 %v805_v10  ;;  %243 = vrot.lane.b32.xlu1 %v1000_v23, %s855_s21  ;;  %v191_v26 = vsel %vm74_vm1, %v1000_v23, 0  ;;  %299 = vrot.lane.b32.xlu2 %v1000_v23, %s856_s24 }
  0x1b   :  { %200 = vmatpush.bf16.xpose.msra.mxu2 %v191_v26  ;;  %v172_v41 = vld [vmem:[%s1161_s6] sm:$0xff] }
  0x1c   :  { %v103_v12 = vsub.f32 1.0, %v102_v11  ;;  %v797_v56 = vld [vmem:[%s1162_s27] ss:$0 sm:$0xff] }
  0x1e   :  { %v104_v13 = vmul.f32 %v805_v10, %v103_v12 }
  0x20   :  { %v105_v14 = vadd.f32 %v805_v10, %v104_v13 }
  0x22   :  { %v986_v15 = vsel %vm106_vm3, %v805_v10, %v105_v14  ;;  %355 = vrot.lane.b32.xlu2 %v1000_v23, %s857_s2 }
  0x2a   :  { %175 = vperm.xlu2 %791, %v172_v41  }
  0x74   :  { %v300_v42 = vpop.permute.xlu2 %299 }
  0x75   :  { %v305_v45 = vsel %vm74_vm1, %v300_v42, 0 }
  0x76   :  { %314 = vmatpush.bf16.xpose.msra.mxu1 %v305_v45 }
  0x7c   :  { %v356_v52 = vpop.permute.xlu2 %355 }
  0x7d   :  { %v361_v53 = vsel %vm74_vm1, %v356_v52, 0 }
  0x84   :  { %v176_v57 = vpop.permute.xlu2 %175 }
  0x85   :  { %vm178_vm7 = vcmp.eq.s32.totalorder %v176_v57, %v797_v56 }
  0x8c   :  { %v244_v43 = vpop.permute.xlu1 %243 }
  0x8d   :  { %v249_v46 = vsel %vm74_vm1, %v244_v43, 0 }
  0x8e   :  { %v91_v5 = vpop.f32.mrf.mxu1  ;;  %258 = vmatpush.bf16.xpose.msra.mxu0 %v249_v46 }
  0x8f   :  { %v982_v6 = vadd.f32 %v793_v4, %v91_v5 }
  0x91   :  { %v98_v7 = vsel %vm97_vm2, %v982_v6, 0.0 }
  0x92   :  { %99 = vadd.xlane.f32.xlu0 %v98_v7 }
  0x96   :  { %v93_v8 = vpop.f32.mrf.mxu1  ;;  %370 = vmatpush.bf16.xpose.msrb.mxu0 %v361_v53 }
 0x105   :  { %v100_v16 = vpop.xlane.xlu0 %99 }
 0x106   :  { %v108_v17 = vmul.f32 %v986_v15, %v100_v16 }
 0x108   :  { %v109_v18 = vsub.f32 %v982_v6, %v108_v17 }
 0x10a   :  { %v110_v19 = vmul.f32 %v109_v18, %v109_v18 }
 0x10c   :  { %v111_v20 = vsel %vm97_vm2, %v110_v19, 0.0 }
 0x10d   :  { %112 = vadd.xlane.f32.xlu0 %v111_v20 }
 0x180   :  { %v113_v24 = vpop.xlane.xlu0 %112 }
 0x181   :  { %v114_v25 = vmul.f32 %v113_v24, %v986_v15 }
 0x183   :  { %v115_v27 = vadd.f32 1e-05, %v114_v25 }
 0x185   :  { %806 = vrsqrt.f32 %v115_v27  ;;  %vm122_vm5 = vweird.f32 %v115_v27 }
 0x18b   :  { %v807_v28 = vpop.eup %806 }
 0x18c   :  { %v117_v29 = vmul.f32 %v807_v28, %v115_v27  ;;  %vm123_vm4 = vweird.f32 %v807_v28 }
 0x18d   :  { %vm124_vm6 = vmor %vm122_vm5, %vm123_vm4 }
 0x18e   :  { %v118_v30 = vmul.f32 %v807_v28, %v117_v29 }
 0x190   :  { %v119_v31 = vmul.f32 0.5, %v118_v30 }
 0x192   :  { %v120_v32 = vsub.f32 1.5, %v119_v31 }
 0x194   :  { %v121_v33 = vmul.f32 %v807_v28, %v120_v32 }
 0x196   :  { %v125_v35 = vsel %vm124_vm6, %v807_v28, %v121_v33 }
 0x197   :  { %v126_v36 = vmul.f32 %v125_v35, %v109_v18 }
 0x199   :  { %v130_v38 = vmul.f32 %v794_v34, %v126_v36 }
 0x19b   :  { %v134_v39 = vadd.f32 %v795_v37, %v130_v38 }
 0x19d   :  { %v135_v40 = vpack.c.bf16 %v134_v39, %v134_v39 }
 0x19f   :  { %689 = vmatmul.msk.bf16.vlgmr.msrb.gmra.mxu1 %vm97_vm2, %v135_v40 }
 0x21c   :  { %v168_v48 = vpop.f32.mrf.mxu1 }
 0x21d   :  { %v169_v49 = vadd.f32 %v796_v47, %v168_v48 }
 0x21f   :  { %v181_v50 = vpack.c.bf16 %v169_v49, %v169_v49 }
 0x221   :  { %297 = vrot.lane.b32.xlu0 %v181_v50, %s856_s24  ;;  %241 = vrot.lane.b32.xlu1 %v181_v50, %s855_s21  ;;  %s864_s21 = smov 16  }
 0x222   :  { %694 = vmatmul.msk.bf16.vlgmr.msra.gmra.mxu2 %vm74_vm1, %v181_v50 }
 0x224   :  { %v170_v51 = vpop.f32.mrf.mxu1 }
 0x229   :  { %353 = vrot.lane.b32.xlu1 %v181_v50, %s857_s2 }
 0x293   :  { %v298_v54 = vpop.permute.xlu0 %297  ;;  %v242_v55 = vpop.permute.xlu1 %241 }
 0x294   :  { %696 = vmatmul.msk.bf16.vlgmr.msra.gmra.mxu0 %vm74_vm1, %v242_v55  ;;  %698 = vmatmul.msk.bf16.vlgmr.msra.gmra.mxu1 %vm74_vm1, %v298_v54 }
 0x29b   :  { %v354_v58 = vpop.permute.xlu1 %353 }
 0x2a4   :  { %700 = vmatmul.msk.bf16.vlgmr.msrb.gmra.mxu0 %vm74_vm1, %v354_v58 }
 0x2a5   :  { %v202_v59 = vpop.f32.mrf.mxu2 }
 0x2a6   :  { %v206_v60 = vmul.f32 0.35355338, %v202_v59 }
 0x2a8   :  { %v207_v61 = vsel %vm178_vm7, %v206_v60, -1e+30 }
 0x2a9   :  { %v209_v62 = vsel %vm208_vm8, %v207_v61, -inf }
 0x2aa   :  { %210 = vmax.xlane.f32.xlu1 %v209_v62 }
 0x2ad   :  { %v204_v63 = vpop.f32.mrf.mxu2 }
 0x311   :  { %v260_v0 = vpop.f32.mrf.mxu0  ;;  %v316_v1 = vpop.f32.mrf.mxu1 }
 0x312   :  { %v264_v2 = vmul.f32 0.35355338, %v260_v0  ;;  %v320_v3 = vmul.f32 0.35355338, %v316_v1  ;;  %v765_v1 = vld [vmem:[%s1142_s10 + $0x8] sm:$0xff] }
 0x313   :  { %451 = vmatpush.bf16.msrb.mxu1 %v765_v1 }
 0x314   :  { %v321_v4 = vsel %vm178_vm7, %v320_v3, -1e+30  ;;  %v265_v5 = vsel %vm178_vm7, %v264_v2, -1e+30  ;;  %v764_v2 = vld [vmem:[%s1142_s10] sm:$0xff] }
 0x315   :  { %v322_v7 = vsel %vm208_vm8, %v321_v4, -inf  ;;  %v266_v8 = vsel %vm208_vm8, %v265_v5, -inf }
 0x316   :  { %323 = vmax.xlane.f32.xlu0 %v322_v7  ;;  %267 = vmax.xlane.f32.xlu2 %v266_v8 }
 0x317   :  { %452 = vmatpush.bf16.msrb.mxu1 %v764_v2 }
 0x319   :  { %v262_v9 = vpop.f32.mrf.mxu0  ;;  %v318_v10 = vpop.f32.mrf.mxu1 }
 0x31d   :  { %v211_v11 = vpop.xlane.xlu1 %210 }
 0x31e   :  { %v212_v12 = vsub.f32 %v207_v61, %v211_v11  ;;  %v798_v11 = vld [vmem:[%s1143_s11] ss:$0 sm:$0xff] }
 0x320   :  { %v213_v13 = vmul.f32 1.442695, %v212_v12 }
 0x321   :  { %v372_v14 = vpop.f32.mrf.mxu0 }
 0x322   :  { %808 = vpow2.f32 %v213_v13  ;;  %v376_v16 = vmul.f32 0.35355338, %v372_v14 }
 0x324   :  { %v377_v17 = vsel %vm178_vm7, %v376_v16, -1e+30 }
 0x325   :  { %v378_v18 = vsel %vm208_vm8, %v377_v17, -inf }
 0x326   :  { %379 = vmax.xlane.f32.xlu2 %v378_v18 }
 0x328   :  { %v809_v19 = vpop.eup %808 }
 0x329   :  { %v374_v20 = vpop.f32.mrf.mxu0  ;;  %v215_v21 = vsel %vm208_vm8, %v809_v19, 0.0 }
 0x32a   :  { %216 = vadd.xlane.f32.xlu1 %v215_v21  ;;  %278 = vrot.lane.b32.xlu0 %v1000_v23, %s859_s28  ;;  %s671_s28 = sshll.u32 %s1152_s20, 4  ;;  %s672_s28 = int_to_ptr.hbm [resolvable:$true] %s671_s28 }
 0x332   :  { %390 = vrot.lane.b32.xlu0 %v1000_v23, %s860_s4 }
 0x33e   :  { %221 = vrot.lane.b32.xlu2 %v1000_v23, %s861_s29 }
 0x346   :  { %334 = vrot.lane.b32.xlu2 %v1000_v23, %s862_s30 }
 0x389   :  { %v268_v22 = vpop.xlane.xlu2 %267  ;;  %v324_v24 = vpop.xlane.xlu0 %323 }
 0x38a   :  { %v269_v25 = vsub.f32 %v265_v5, %v268_v22  ;;  %v325_v27 = vsub.f32 %v321_v4, %v324_v24  ;;  %v766_v24 = vld [vmem:[%s1146_s14] sm:$0xff] }
 0x38c   :  { %v270_v26 = vmul.f32 1.442695, %v269_v25  ;;  %v326_v28 = vmul.f32 1.442695, %v325_v27  ;;  %v775_v25 = vld [vmem:[%s1148_s16 + $0x38] sm:$0xff] }
 0x38d   :  { %607 = vmatpush.bf16.msra.mxu0 %v775_v25 }
 0x38e   :  { %810 = vpow2.f32 %v270_v26 }
 0x38f   :  { %812 = vpow2.f32 %v326_v28 }
 0x394   :  { %v811_v29 = vpop.eup %810 }
 0x395   :  { %v272_v30 = vsel %vm208_vm8, %v811_v29, 0.0  ;;  %v813_v33 = vpop.eup %812 }
 0x396   :  { %273 = vadd.xlane.f32.xlu1 %v272_v30  ;;  %v328_v23 = vsel %vm208_vm8, %v813_v33, 0.0 }
 0x399   :  { %v380_v31 = vpop.xlane.xlu2 %379 }
 0x39a   :  { %v381_v32 = vsub.f32 %v377_v17, %v380_v31 }
 0x39c   :  { %v382_v34 = vmul.f32 1.442695, %v381_v32  ;;  %v279_v36 = vpop.permute.xlu0 %278 }
 0x39d   :  { %v217_v35 = vpop.xlane.xlu1 %216 }
 0x39e   :  { %814 = vpow2.f32 %v382_v34  ;;  %329 = vadd.xlane.f32.xlu1 %v328_v23 }
 0x39f   :  { %816 = vrcp.f32 %v217_v35  ;;  %v799_v35 = vld [vmem:[%s1144_s12] ss:$0 sm:$0xff] }
 0x3a1   :  { %v222_v37 = vpop.permute.xlu2 %221 }
 0x3a2   :  { %234 = vmatpush.bf16.msra.mxu3 %v222_v37 }
 0x3a4   :  { %v815_v38 = vpop.eup %814  ;;  %v391_v43 = vpop.permute.xlu0 %390 }
 0x3a5   :  { %v817_v39 = vpop.eup %816  ;;  %v384_v40 = vsel %vm208_vm8, %v815_v38, 0.0 }
 0x3a6   :  { %291 = vmatpush.bf16.msrb.mxu3 %v279_v36  ;;  %v219_v41 = vmul.f32 %v817_v39, %v809_v19  ;;  %385 = vadd.xlane.f32.xlu1 %v384_v40  ;;  %v774_v40 = vld [vmem:[%s1148_s16 + $0x30] sm:$0xff] }
 0x3a7   :  { %608 = vmatpush.bf16.msra.mxu0 %v774_v40 }
 0x3a8   :  { %v220_v42 = vpack.c.bf16 %v219_v41, %v219_v41  ;;  %v773_v41 = vld [vmem:[%s1148_s16 + $0x28] sm:$0xff] }
 0x3a9   :  { %v335_v44 = vpop.permute.xlu2 %334 }
 0x3aa   :  { %695 = vmatmul.msk.bf16.vlgmr.msra.gmra.mxu3 %vm208_vm8, %v220_v42  ;;  %347 = vmatpush.bf16.msrb.mxu2 %v335_v44  ;;  %v772_v42 = vld [vmem:[%s1148_s16 + $0x20] sm:$0xff]  ;;  %v770_v44 = vld [vmem:[%s1148_s16 + $0x10] sm:$0xff] }
 0x3ab   :  { %403 = vmatpush.bf16.msra.mxu3 %v391_v43  ;;  %609 = vmatpush.bf16.msra.mxu0 %v773_v41  ;;  %v771_v43 = vld [vmem:[%s1148_s16 + $0x18] sm:$0xff] }
 0x3af   :  { %610 = vmatpush.bf16.msra.mxu0 %v772_v42 }
 0x3b3   :  { %611 = vmatpush.bf16.msra.mxu0 %v771_v43 }
 0x3b7   :  { %612 = vmatpush.bf16.msra.mxu0 %v770_v44 }
 0x409   :  { %v274_v45 = vpop.xlane.xlu1 %273 }
 0x40a   :  { %818 = vrcp.f32 %v274_v45  ;;  %v769_v45 = vld [vmem:[%s1148_s16 + $0x8] sm:$0xff] }
 0x40b   :  { %613 = vmatpush.bf16.msra.mxu0 %v769_v45 }
 0x410   :  { %v819_v46 = vpop.eup %818 }
 0x411   :  { %v276_v47 = vmul.f32 %v819_v46, %v811_v29  ;;  %v330_v48 = vpop.xlane.xlu1 %329  ;;  %v768_v46 = vld [vmem:[%s1148_s16] sm:$0xff] }
 0x412   :  { %820 = vrcp.f32 %v330_v48  ;;  %614 = vmatpush.bf16.msra.mxu0 %v768_v46  ;;  %v801_v48 = vld [vmem:[%s1147_s15] ss:$0 sm:$0xff] }
 0x413   :  { %v277_v49 = vpack.c.bf16 %v276_v47, %v276_v47  ;;  %v777_v47 = vld [vmem:[%s1150_s18 + $0x8] sm:$0xff] }
 0x415   :  { %697 = vmatmul.msk.bf16.vlgmr.msrb.gmra.mxu3 %vm208_vm8, %v277_v49  ;;  %v776_v49 = vld [vmem:[%s1150_s18] sm:$0xff] }
 0x416   :  { %656 = vmatpush.bf16.msrb.mxu3 %v777_v47 }
 0x418   :  { %v821_v50 = vpop.eup %820 }
 0x419   :  { %v332_v51 = vmul.f32 %v821_v50, %v813_v33  ;;  %v386_v52 = vpop.xlane.xlu1 %385 }
 0x41a   :  { %822 = vrcp.f32 %v386_v52  ;;  %657 = vmatpush.bf16.msrb.mxu3 %v776_v49 }
 0x41b   :  { %v333_v53 = vpack.c.bf16 %v332_v51, %v332_v51 }
 0x41d   :  { %699 = vmatmul.msk.bf16.vlgmr.msrb.gmra.mxu2 %vm208_vm8, %v333_v53 }
 0x420   :  { %v823_v54 = vpop.eup %822 }
 0x421   :  { %v388_v55 = vmul.f32 %v823_v54, %v815_v38 }
 0x423   :  { %v389_v56 = vpack.c.bf16 %v388_v55, %v388_v55 }
 0x425   :  { %701 = vmatmul.msk.bf16.vlgmr.msra.gmra.mxu3 %vm208_vm8, %v389_v56 }
 0x42d   :  { %v236_v57 = vpop.f32.mrf.mxu3 }
 0x435   :  { %v238_v58 = vpop.f32.mrf.mxu3 }
 0x498   :  { %v293_v59 = vpop.f32.mrf.mxu3 }
 0x499   :  { %410 = vrot.lane.b32.xlu1 %v293_v59, %s863_s0 }
 0x4a0   :  { %v295_v60 = vpop.f32.mrf.mxu3  ;;  %v349_v61 = vpop.f32.mrf.mxu2 }
 0x4a1   :  { %414 = vrot.lane.b32.xlu2 %v349_v61, %s864_s21 }
 0x4a8   :  { %v351_v62 = vpop.f32.mrf.mxu2  ;;  %v405_v63 = vpop.f32.mrf.mxu3 }
 0x4a9   :  { %418 = vrot.lane.b32.xlu0 %v405_v63, %s865_s8  ;;  %v802_v63 = vld [vmem:[%s1149_s17] ss:$0 sm:$0xff] }
 0x4b0   :  { %v407_v0 = vpop.f32.mrf.mxu3 }
 0x4fb   :  { %v415_v5 = vpop.permute.xlu2 %414 }
 0x50b   :  { %v411_v3 = vpop.permute.xlu1 %410 }
 0x50c   :  { %v421_v4 = vsel %vm74_vm1, %v236_v57, %v411_v3 }
 0x50d   :  { %v422_v8 = vsel %vm208_vm8, %v421_v4, %v415_v5  ;;  %v803_v5 = vld [vmem:[%s1151_s19] ss:$0 sm:$0xff] }
 0x51b   :  { %v419_v7 = vpop.permute.xlu0 %418 }
 0x51c   :  { %v424_v9 = vsel %vm423_vm9, %v422_v8, %v419_v7 }
 0x51d   :  { %v425_v10 = vpack.c.bf16 %v424_v9, %v424_v9 }
 0x51f   :  { %710 = vmatmul.msk.bf16.vlgmr.msrb.gmra.mxu1 %vm97_vm2, %v425_v10 }
 0x59c   :  { %v454_v12 = vpop.f32.mrf.mxu1 }
 0x59d   :  { %v458_v13 = vadd.f32 %v454_v12, %v982_v6  ;;  %v767_v6 = vld [vmem:[%s1146_s14 + $0x8] sm:$0xff]  ;;  %s866_s14 = smov [#allocation2]  }
 0x59e   :  { %526 = vmatpush.bf16.msra.mxu2 %v767_v6  ;;  %s669_s9 = sshll.u32 %s866_s14, 4  ;;  %s670_s9 = int_to_ptr.vmem [resolvable:$true] %s669_s9 }
 0x59f   :  { %v1066_v14 = vadd.f32 %v798_v11, %v458_v13 }
 0x5a1   :  { %v466_v16 = vsel %vm97_vm2, %v1066_v14, 0.0 }
 0x5a2   :  { %467 = vadd.xlane.f32.xlu2 %v466_v16  ;;  %527 = vmatpush.bf16.msra.mxu2 %v766_v24 }
 0x5a4   :  { %v456_v17 = vpop.f32.mrf.mxu1 }
 0x615   :  { %v468_v18 = vpop.xlane.xlu2 %467 }
 0x616   :  { %v469_v19 = vmul.f32 %v468_v18, %v986_v15 }
 0x618   :  { %v470_v20 = vsub.f32 %v1066_v14, %v469_v19 }
 0x61a   :  { %v471_v21 = vmul.f32 %v470_v20, %v470_v20 }
 0x61c   :  { %v472_v22 = vsel %vm97_vm2, %v471_v21, 0.0 }
 0x61d   :  { %473 = vadd.xlane.f32.xlu0 %v472_v22 }
 0x690   :  { %v474_v26 = vpop.xlane.xlu0 %473 }
 0x691   :  { %v475_v27 = vmul.f32 %v474_v26, %v986_v15  ;;  %v800_v15 = vld [vmem:[%s1145_s13] ss:$0 sm:$0xff] }
 0x693   :  { %v476_v28 = vadd.f32 1e-05, %v475_v27 }
 0x695   :  { %824 = vrsqrt.f32 %v476_v28  ;;  %vm483_vm11 = vweird.f32 %v476_v28 }
 0x69b   :  { %v825_v29 = vpop.eup %824 }
 0x69c   :  { %v478_v30 = vmul.f32 %v825_v29, %v476_v28  ;;  %vm484_vm10 = vweird.f32 %v825_v29 }
 0x69d   :  { %vm485_vm12 = vmor %vm483_vm11, %vm484_vm10 }
 0x69e   :  { %v479_v31 = vmul.f32 %v825_v29, %v478_v30 }
 0x6a0   :  { %v480_v32 = vmul.f32 0.5, %v479_v31 }
 0x6a2   :  { %v481_v33 = vsub.f32 1.5, %v480_v32 }
 0x6a4   :  { %v482_v34 = vmul.f32 %v825_v29, %v481_v33 }
 0x6a6   :  { %v486_v23 = vsel %vm485_vm12, %v825_v29, %v482_v34 }
 0x6a7   :  { %v487_v36 = vmul.f32 %v486_v23, %v470_v20 }
 0x6a9   :  { %v491_v37 = vmul.f32 %v799_v35, %v487_v36 }
 0x6ab   :  { %v495_v38 = vadd.f32 %v800_v15, %v491_v37 }
 0x6ad   :  { %v496_v39 = vpack.c.bf16 %v495_v38, %v495_v38 }
 0x6af   :  { %719 = vmatmul.msk.bf16.vlgmr.msra.gmra.mxu2 %vm97_vm2, %v496_v39 }
 0x732   :  { %v529_v50 = vpop.f32.mrf.mxu2 }
 0x733   :  { %v530_v51 = vadd.f32 %v801_v48, %v529_v50 }
 0x735   :  { %v533_v52 = vmul.f32 %v530_v51, %v530_v51 }
 0x737   :  { %v534_v53 = vmul.f32 %v533_v52, %v530_v51 }
 0x739   :  { %v535_v54 = vmul.f32 0.044715, %v534_v53 }
 0x73a   :  { %v531_v55 = vpop.f32.mrf.mxu2 }
 0x73b   :  { %v536_v56 = vadd.f32 %v535_v54, %v530_v51 }
 0x73d   :  { %v537_v57 = vmul.f32 0.7978846, %v536_v56 }
 0x73f   :  { %826 = vtanh.f32 %v537_v57 }
 0x745   :  { %v827_v58 = vpop.eup %826 }
 0x746   :  { %v539_v59 = vadd.f32 1.0, %v827_v58 }
 0x748   :  { %v540_v60 = vmul.f32 0.5, %v539_v59 }
 0x74a   :  { %v541_v61 = vmul.f32 %v540_v60, %v530_v51 }
 0x74c   :  { %v542_v62 = vpack.c.bf16 %v541_v61, %v541_v61 }
 0x74e   :  { %615 = vmatmul.bf16.vlgmr.msra.gmra.mxu0 %v542_v62 }
 0x7cb   :  { %v616_v0 = vpop.f32.mrf.mxu0 }
 0x7cc   :  { %v620_v1 = vadd.f32 %v616_v0, %v1066_v14 }
 0x7ce   :  { %v625_v2 = vadd.f32 %v802_v63, %v620_v1 }
 0x7d0   :  { %v626_v3 = vpack.c.bf16 %v625_v2, %v625_v2 }
 0x7d2   :  { %760 = vmatmul.msk.bf16.vlgmr.msrb.gmra.mxu3 %vm97_vm2, %v626_v3 }
 0x7d3   :  { %v618_v4 = vpop.f32.mrf.mxu0 }
 0x855   :  { %v659_v7 = vpop.f32.mrf.mxu3 }
 0x856   :  { %v660_v8 = vadd.f32 %v803_v5, %v659_v7 }
 0x858   :  { %663 = vst.msk [vmem:[#allocation2] sm:$0xff] %vm97_vm2, %v660_v8 }
 0x859   :  { %674 = dma.vmem_to_hbm [thread:$0]  %s670_s9, 128, %s672_s28, [#allocation3]  }
 0x85d   :  { %v661_v9 = vpop.f32.mrf.mxu3 }
 0x85e   :  { %852 = dma.done.wait [#allocation3], 128  }
 0x85f   :  { %853 = vsyncadd [#allocation3], 4294967168 }
 0x860   :  { %679 = vsyncpa [#allocation3], 1 }

</bundles_post_ra>
